<compile_context>
chip_gen: v6e
topology: v6e:2x2x1
jax: 0.10.0
libtpu: 0.0.40
codegen_flags: <defaults>
</compile_context>

<pallas_src>
import functools
import math

import jax
import jax.numpy as jnp
from jax import lax
from jax.experimental import pallas as pl
from jax.experimental.pallas import tpu as pltpu


_PARAM_ORDER = ("wqkv", "bqkv", "wo", "bo", "w1", "b1", "w2", "b2",
                "g1", "be1", "g2", "be2")

# Flipped to False at runtime if this JAX/Mosaic build rejects
# pipeline_mode=pl.Buffered(1) on constant weight blocks.
_SINGLE_BUFFER_WEIGHTS = [True]


def _layernorm(x, gamma, beta, eps=1e-5):
    mu = jnp.mean(x, axis=-1, keepdims=True)
    var = jnp.mean((x - mu) ** 2, axis=-1, keepdims=True)
    return (x - mu) * lax.rsqrt(var + eps) * gamma + beta


# --------------------------------------------------------------------------- #
# Kernel
# --------------------------------------------------------------------------- #
def encoder_layer_kernel(
    x_ref,       # (B_blk, L, E)  activations (f32 or bf16)
    wqkv_ref,    # (E, 3E)  bf16  in_proj weight, pre-transposed
    bqkv_ref,    # (1, 3E)  f32
    wo_ref,      # (E, E)   bf16  out_proj weight, pre-transposed
    bo_ref,      # (1, E)   f32
    w1_ref,      # (E, F)   bf16  linear1 weight, pre-transposed
    b1_ref,      # (1, F)   f32
    w2_ref,      # (F, E)   bf16  linear2 weight, pre-transposed
    b2_ref,      # (1, E)   f32
    g1_ref, be1_ref, g2_ref, be2_ref,   # (1, E) f32 LayerNorm params
    out_ref,     # (B_blk, L, E)
    *rest,       # [attn_ref (B_blk, L, L) f32] + qkv_sc (M,3E) bf16, ctx_sc (M,E) bf16
    nhead, ffn_chunk, need_weights,
):
    if need_weights:
        attn_ref, qkv_sc, ctx_sc = rest
    else:
        attn_ref = None
        qkv_sc, ctx_sc = rest

    B_blk, L, E = x_ref.shape
    M = B_blk * L
    head_dim = E // nhead
    scale = 1.0 / math.sqrt(head_dim)
    inv_h = 1.0 / nhead

    # residual kept in f32 (PyTorch computes residual + norm in f32)
    x = x_ref[...].reshape(M, E).astype(jnp.float32)
    x_b = x.astype(jnp.bfloat16)

    # ---- fused QKV projection for the whole batch block: one (M,E)x(E,3E) ----
    qkv = jnp.dot(x_b, wqkv_ref[...],
                  preferred_element_type=jnp.float32) + bqkv_ref[...]
    qkv_sc[...] = qkv.astype(jnp.bfloat16)

    # ---- attention: loop batch elems (dynamic sublane offset), static head
    #      lane slices; only one (L, L) score/prob tile live at a time ---------
    @pl.loop(0, B_blk)
    def _attention(b):
        row0 = pl.multiple_of(b * L, L)
        rows = pl.ds(row0, L)
        attn_acc = jnp.zeros((L, L), jnp.float32)
        for h in range(nhead):                       # static lane offsets
            c0 = h * head_dim
            qh = qkv_sc[rows, pl.ds(c0, head_dim)]           # (L, hd) bf16
            kh = qkv_sc[rows, pl.ds(E + c0, head_dim)]
            vh = qkv_sc[rows, pl.ds(2 * E + c0, head_dim)]
            s = lax.dot_general(qh, kh, (((1,), (1,)), ((), ())),
                                preferred_element_type=jnp.float32) * scale
            s = s - jnp.max(s, axis=-1, keepdims=True)
            p = jnp.exp(s)
            p = p / jnp.sum(p, axis=-1, keepdims=True)        # exact softmax
            attn_acc = attn_acc + p * inv_h
            ctx_sc[rows, pl.ds(c0, head_dim)] = jnp.dot(
                p.astype(jnp.bfloat16), vh,
                preferred_element_type=jnp.float32).astype(jnp.bfloat16)
        if attn_ref is not None:
            attn_ref[b] = attn_acc                   # head-averaged weights

    # ---- fused out-projection over all heads: single (M,E)x(E,E), K = E -----
    attn_out = jnp.dot(ctx_sc[...], wo_ref[...],
                       preferred_element_type=jnp.float32) + bo_ref[...]

    # ---- residual + norm1 (f32) ----------------------------------------------
    y = _layernorm(x + attn_out, g1_ref[...], be1_ref[...])
    y_b = y.astype(jnp.bfloat16)

    # ---- feed-forward, hidden dim chunked with a visible fori_loop -----------
    F = w1_ref.shape[1]
    n_chunks = F // ffn_chunk
    if n_chunks <= 1:
        h1 = jnp.dot(y_b, w1_ref[...],
                     preferred_element_type=jnp.float32) + b1_ref[...]
        h1 = jnp.maximum(h1, 0.0).astype(jnp.bfloat16)        # ReLU
        ff = jnp.dot(h1, w2_ref[...], preferred_element_type=jnp.float32)
    else:
        def ffn_body(c, acc):
            c0 = pl.multiple_of(c * ffn_chunk, ffn_chunk)     # 128-aligned chunk
            cols = pl.ds(c0, ffn_chunk)
            h1 = jnp.dot(y_b, w1_ref[:, cols],
                         preferred_element_type=jnp.float32) + b1_ref[:, cols]
            h1 = jnp.maximum(h1, 0.0).astype(jnp.bfloat16)
            return acc + jnp.dot(h1, w2_ref[cols, :],
                                 preferred_element_type=jnp.float32)
        ff = lax.fori_loop(0, n_chunks, ffn_body,
                           jnp.zeros((M, E), jnp.float32),
                           unroll=(n_chunks <= 4))
    ff = ff + b2_ref[...]

    # ---- residual + norm2 (f32) -----------------------------------------------
    out = _layernorm(y + ff, g2_ref[...], be2_ref[...])
    out_ref[...] = out.reshape(B_blk, L, E).astype(out_ref.dtype)


# --------------------------------------------------------------------------- #
# Host-side helpers
# --------------------------------------------------------------------------- #
def _weight_spec(arr, single_buffer):
    nd = arr.ndim
    index_map = lambda *_: (0,) * nd          # constant block across the grid
    if single_buffer and hasattr(pl, "Buffered"):
        return pl.BlockSpec(arr.shape, index_map, pipeline_mode=pl.Buffered(1))
    return pl.BlockSpec(arr.shape, index_map)


def _pick_ffn_chunk(F, requested):
    """Largest 128-aligned divisor of F that is <= requested (else F)."""
    req = max(1, min(int(requested), F))
    if req >= F:
        return F
    for c in range(req, 127, -1):
        if F % c == 0 and c % 128 == 0:
            return c
    return F


def _physical_vmem_bytes():
    try:
        return int(pltpu.get_tpu_info().vmem_capacity_bytes)
    except Exception:
        return 64 * 2 ** 20            # conservative (v7x per-TC VMEM)


def _vmem_limit_bytes(params, B_blk, L, E, F, nhead, ffn_chunk, need_weights,
                      single_buffer, in_dtype, out_dtype):
    M = B_blk * L
    nbytes = lambda a: a.size * a.dtype.itemsize
    wbytes = sum(nbytes(params[k]) for k in _PARAM_ORDER)
    wbytes *= 1 if single_buffer else 2                       # buffer count
    io = 2 * M * E * (jnp.dtype(in_dtype).itemsize + jnp.dtype(out_dtype).itemsize)
    if need_weights:
        io += 2 * B_blk * L * L * 4
    scratch = M * 3 * E * 2 + M * E * 2                       # bf16 qkv + ctx
    inter = (M * 3 * E * 4                                    # qkv f32
             + 3 * L * L * 4                                  # s, p per head
             + 4 * M * E * 4                                  # x, attn_out, y, ff
             + 2 * M * min(ffn_chunk, F) * 4)                 # ffn chunk
    need = wbytes + io + scratch + int(1.5 * inter)
    cap = min(int(_physical_vmem_bytes() * 0.78), 100 * 2 ** 20)
    return int(max(16 * 2 ** 20, min(need, cap)))


def _cost_estimate(Np, L, E, F, nhead, need_weights, in_dtype, out_dtype,
                   weight_bytes):
    M = Np * L
    hd = E // nhead
    mm_flops = 2 * M * E * 3 * E + 2 * M * E * E + 4 * M * E * F
    attn_flops = 4 * Np * nhead * L * L * hd
    bytes_accessed = (M * E * (jnp.dtype(in_dtype).itemsize +
                               jnp.dtype(out_dtype).itemsize)
                      + (Np * L * L * 4 if need_weights else 0)
                      + weight_bytes)
    return pl.CostEstimate(flops=int(mm_flops + attn_flops),
                           transcendentals=int(Np * nhead * L * L),
                           bytes_accessed=int(bytes_accessed))


def encoder_layer_call(x, params, nhead, *, need_weights=True, ffn_chunk=2048,
                       batch_block=1, out_dtype=jnp.float32):
    """x: (Np, L, E) batch-first (Np divisible by batch_block).
    Returns out (Np, L, E) [, attn (Np, L, L) f32]."""
    Np, L, E = x.shape
    assert E % nhead == 0, "d_model must be divisible by nhead"
    assert Np % batch_block == 0
    B_blk = batch_block
    M = B_blk * L
    F = params["w1"].shape[1]
    chunk = _pick_ffn_chunk(F, ffn_chunk)

    kernel = functools.partial(encoder_layer_kernel, nhead=nhead,
                               ffn_chunk=chunk, need_weights=need_weights)

    x_spec = pl.BlockSpec((B_blk, L, E), lambda b: (b, 0, 0))
    if need_weights:
        out_specs = (pl.BlockSpec((B_blk, L, E), lambda b: (b, 0, 0)),
                     pl.BlockSpec((B_blk, L, L), lambda b: (b, 0, 0)))
        out_shape = (jax.ShapeDtypeStruct((Np, L, E), out_dtype),
                     jax.ShapeDtypeStruct((Np, L, L), jnp.float32))
    else:
        out_specs = pl.BlockSpec((B_blk, L, E), lambda b: (b, 0, 0))
        out_shape = jax.ShapeDtypeStruct((Np, L, E), out_dtype)

    scratch = [pltpu.VMEM((M, 3 * E), jnp.bfloat16),
               pltpu.VMEM((M, E), jnp.bfloat16)]
    weight_bytes = sum(params[k].size * params[k].dtype.itemsize
                       for k in _PARAM_ORDER)
    ce = _cost_estimate(Np, L, E, F, nhead, need_weights, x.dtype, out_dtype,
                        weight_bytes)
    args = (x, *[params[k] for k in _PARAM_ORDER])

    def build_and_run(single_buffer):
        in_specs = [x_spec] + [_weight_spec(params[k], single_buffer)
                               for k in _PARAM_ORDER]
        vmem = _vmem_limit_bytes(params, B_blk, L, E, F, nhead, chunk,
                                 need_weights, single_buffer, x.dtype, out_dtype)
        fn = pl.pallas_call(
            kernel,
            grid=(Np // B_blk,),
            in_specs=in_specs,
            out_specs=out_specs,
            out_shape=out_shape,
            scratch_shapes=scratch,
            compiler_params=pltpu.CompilerParams(
                dimension_semantics=("parallel",),
                vmem_limit_bytes=vmem),
            cost_estimate=ce,
        )
        return fn(*args)

    if _SINGLE_BUFFER_WEIGHTS[0]:
        try:
            return build_and_run(True)
        except Exception:
            _SINGLE_BUFFER_WEIGHTS[0] = False     # fall back, remember
    return build_and_run(False)


def transformer_encoder_forward(src, layer_params, nhead, final_norm=None,
                                need_weights=True, ffn_chunk=2048,
                                batch_block=None,
                                interlayer_dtype=jnp.bfloat16):
    """Mirrors TransformerEncoder.forward (mask=None, eval-mode dropout).

    src: (L, N, E) seq-first.
    Returns (output (L, N, E), output_weights (N, L, L, num_layers) or None)."""
    L, N, E = src.shape
    out_dtype_final = src.dtype
    x = jnp.transpose(src, (1, 0, 2))                    # (N, L, E), once

    # Batch blocking: target >=256 rows on the MXU M axis per grid step.
    if batch_block is None:
        batch_block = max(1, min(8, -(-256 // max(L, 1))))
    B_blk = max(1, min(N, batch_block))
    Np = -(-N // B_blk) * B_blk
    if Np != N:
        x = jnp.concatenate([x, jnp.zeros((Np - N, L, E), x.dtype)], axis=0)

    num_layers = len(layer_params)
    weights_list = []
    for li, params in enumerate(layer_params):
        last = li == num_layers - 1
        out_dt = out_dtype_final if last else interlayer_dtype
        res = encoder_layer_call(x, params, nhead, need_weights=need_weights,
                                 ffn_chunk=ffn_chunk, batch_block=B_blk,
                                 out_dtype=out_dt)
        if need_weights:
            x, w = res
            weights_list.append(w)
        else:
            x = res

    x = x[:N]
    if final_norm is not None:
        gamma, beta = final_norm
        x = _layernorm(x.astype(jnp.float32), gamma, beta).astype(out_dtype_final)
    out = jnp.transpose(x, (1, 0, 2))                    # (L, N, E)
    attn = (jnp.stack([w[:N] for w in weights_list], axis=-1)
            if need_weights else None)
    return out, attn


def prepare_layer_params(raw, compute_dtype=jnp.bfloat16):
    """PyTorch-layout weights -> kernel layout (one-time host work):
       matmul weights transposed (kernel computes x @ W) and cast to bf16;
       biases / LayerNorm params kept f32.  1/sqrt(head_dim) is applied to the
       f32 scores inside the kernel (exact PyTorch semantics)."""
    E = raw["wo"].shape[0]
    return dict(
        wqkv=jnp.asarray(raw["wqkv"].T, compute_dtype),            # (E, 3E)
        bqkv=jnp.asarray(raw["bqkv"], jnp.float32).reshape(1, 3 * E),
        wo=jnp.asarray(raw["wo"].T, compute_dtype),                # (E, E)
        bo=jnp.asarray(raw["bo"], jnp.float32).reshape(1, E),
        w1=jnp.asarray(raw["w1"].T, compute_dtype),                # (E, F)
        b1=jnp.asarray(raw["b1"], jnp.float32).reshape(1, -1),
        w2=jnp.asarray(raw["w2"].T, compute_dtype),                # (F, E)
        b2=jnp.asarray(raw["b2"], jnp.float32).reshape(1, E),
        g1=jnp.asarray(raw["g1"], jnp.float32).reshape(1, E),
        be1=jnp.asarray(raw["be1"], jnp.float32).reshape(1, E),
        g2=jnp.asarray(raw["g2"], jnp.float32).reshape(1, E),
        be2=jnp.asarray(raw["be2"], jnp.float32).reshape(1, E),
    )


def _make_layer_params(key, d_model, dim_ff):
    """Raw params in PyTorch layout (in_proj_weight (3E,E), linear1 (F,E), ...)."""
    ks = jax.random.split(key, 4)
    s = 0.05
    return dict(
        wqkv=jax.random.normal(ks[0], (3 * d_model, d_model), jnp.float32) * s,
        bqkv=jnp.zeros((3 * d_model,), jnp.float32),
        wo=jax.random.normal(ks[1], (d_model, d_model), jnp.float32) * s,
        bo=jnp.zeros((d_model,), jnp.float32),
        w1=jax.random.normal(ks[2], (dim_ff, d_model), jnp.float32) * s,
        b1=jnp.zeros((dim_ff,), jnp.float32),
        w2=jax.random.normal(ks[3], (d_model, dim_ff), jnp.float32) * s,
        b2=jnp.zeros((d_model,), jnp.float32),
        g1=jnp.ones((d_model,), jnp.float32),
        be1=jnp.zeros((d_model,), jnp.float32),
        g2=jnp.ones((d_model,), jnp.float32),
        be2=jnp.zeros((d_model,), jnp.float32),
    )


def _reference_layer(x, raw, nhead):
    """Pure-JAX f32 reference of one post-norm TransformerEncoderLayer.
    x: (N, L, E).  Returns (out (N, L, E), attn (N, L, L))."""
    N, L, E = x.shape
    hd = E // nhead
    qkv = x @ raw["wqkv"].T + raw["bqkv"]
    q, k, v = jnp.split(qkv, 3, axis=-1)
    split = lambda t: t.reshape(N, L, nhead, hd).transpose(0, 2, 1, 3)
    qh, kh, vh = split(q), split(k), split(v)
    s = jnp.einsum("nhqd,nhkd->nhqk", qh, kh) / math.sqrt(hd)
    p = jax.nn.softmax(s, axis=-1)
    ctx = jnp.einsum("nhqk,nhkd->nhqd", p, vh)
    ctx = ctx.transpose(0, 2, 1, 3).reshape(N, L, E)
    attn_out = ctx @ raw["wo"].T + raw["bo"]
    y = _layernorm(x + attn_out, raw["g1"], raw["be1"])
    h = jax.nn.relu(y @ raw["w1"].T + raw["b1"])
    ff = h @ raw["w2"].T + raw["b2"]
    out = _layernorm(y + ff, raw["g2"], raw["be2"])
    return out, jnp.mean(p, axis=1)


if __name__ == "__main__":
    L, N, E = 8, 2, 32          # seq len, batch, d_model
    nhead = 4
    dim_ff = 64
    num_layers = 2

    key = jax.random.PRNGKey(0)
    keys = jax.random.split(key, 1 + num_layers)
    src = jax.random.normal(keys[0], (L, N, E), jnp.float32)

    raw_params = [_make_layer_params(keys[1 + i], E, dim_ff)
                  for i in range(num_layers)]
    layer_params = [prepare_layer_params(p) for p in raw_params]

    out, attn_weights = transformer_encoder_forward(
        src, layer_params, nhead, final_norm=None)       # norm=None (optional)
    jax.block_until_ready((out, attn_weights))

    assert out.shape == (L, N, E), out.shape
    assert attn_weights.shape == (N, L, L, num_layers), attn_weights.shape
    assert bool(jnp.all(jnp.isfinite(out)))
    assert bool(jnp.all(jnp.isfinite(attn_weights)))
    # exact (non-approx) softmax normalization -> rows sum to 1 tightly
    assert bool(jnp.allclose(jnp.sum(attn_weights, axis=2), 1.0, atol=2e-3))

    # pure-JAX f32 reference parity (bf16 matmuls / bf16 inter-layer -> loose tol)
    ref_x = jnp.transpose(src, (1, 0, 2))
    ref_w = []
    for p in raw_params:
        ref_x, w = _reference_layer(ref_x, p, nhead)
        ref_w.append(w)
    ref_out = jnp.transpose(ref_x, (1, 0, 2))
    ref_attn = jnp.stack(ref_w, axis=-1)
    out_err = float(jnp.max(jnp.abs(out.astype(jnp.float32) - ref_out)))
    attn_err = float(jnp.max(jnp.abs(attn_weights - ref_attn)))
    assert out_err < 0.15, out_err
    assert attn_err < 0.05, attn_err

    print("KERNEL_OK")
</pallas_src>

<mosaic_0001>
module attributes {stable_mosaic.version = 11 : i64} {
  func.func @encoder_layer_kernel(%arg0: i32, %arg1: memref<2x8x32xf32, #tpu.memory_space<vmem>>, %arg2: memref<32x96xbf16, #tpu.memory_space<vmem>>, %arg3: memref<1x96xf32, #tpu.memory_space<vmem>>, %arg4: memref<32x32xbf16, #tpu.memory_space<vmem>>, %arg5: memref<1x32xf32, #tpu.memory_space<vmem>>, %arg6: memref<32x64xbf16, #tpu.memory_space<vmem>>, %arg7: memref<1x64xf32, #tpu.memory_space<vmem>>, %arg8: memref<64x32xbf16, #tpu.memory_space<vmem>>, %arg9: memref<1x32xf32, #tpu.memory_space<vmem>>, %arg10: memref<1x32xf32, #tpu.memory_space<vmem>>, %arg11: memref<1x32xf32, #tpu.memory_space<vmem>>, %arg12: memref<1x32xf32, #tpu.memory_space<vmem>>, %arg13: memref<1x32xf32, #tpu.memory_space<vmem>>, %arg14: memref<2x8x32xbf16, #tpu.memory_space<vmem>>, %arg15: memref<2x8x8xf32, #tpu.memory_space<vmem>>, %arg16: memref<16x96xbf16, #tpu.memory_space<vmem>>, %arg17: memref<16x32xbf16, #tpu.memory_space<vmem>>) attributes {dimension_semantics = [#tpu.dimension_semantics<parallel>], iteration_bounds = array<i64: 1>, scalar_prefetch = 0 : i64, scratch_operands = 2 : i64, tpu.core_type = #tpu.core_type<tc>, window_params = [{transform_indices = @transform_0, window_bounds = array<i64: 2, 8, 32>}, {pipeline_mode = #tpu.pipeline_mode<synchronous>, transform_indices = @transform_1, window_bounds = array<i64: 32, 96>}, {pipeline_mode = #tpu.pipeline_mode<synchronous>, transform_indices = @transform_2, window_bounds = array<i64: 1, 96>}, {pipeline_mode = #tpu.pipeline_mode<synchronous>, transform_indices = @transform_3, window_bounds = array<i64: 32, 32>}, {pipeline_mode = #tpu.pipeline_mode<synchronous>, transform_indices = @transform_4, window_bounds = array<i64: 1, 32>}, {pipeline_mode = #tpu.pipeline_mode<synchronous>, transform_indices = @transform_5, window_bounds = array<i64: 32, 64>}, {pipeline_mode = #tpu.pipeline_mode<synchronous>, transform_indices = @transform_6, window_bounds = array<i64: 1, 64>}, {pipeline_mode = #tpu.pipeline_mode<synchronous>, transform_indices = @transform_7, window_bounds = array<i64: 64, 32>}, {pipeline_mode = #tpu.pipeline_mode<synchronous>, transform_indices = @transform_8, window_bounds = array<i64: 1, 32>}, {pipeline_mode = #tpu.pipeline_mode<synchronous>, transform_indices = @transform_9, window_bounds = array<i64: 1, 32>}, {pipeline_mode = #tpu.pipeline_mode<synchronous>, transform_indices = @transform_10, window_bounds = array<i64: 1, 32>}, {pipeline_mode = #tpu.pipeline_mode<synchronous>, transform_indices = @transform_11, window_bounds = array<i64: 1, 32>}, {pipeline_mode = #tpu.pipeline_mode<synchronous>, transform_indices = @transform_12, window_bounds = array<i64: 1, 32>}, {transform_indices = @transform_13, window_bounds = array<i64: 2, 8, 32>}, {transform_indices = @transform_14, window_bounds = array<i64: 2, 8, 8>}]} {
    %c0 = arith.constant 0 : index
    %c0_0 = arith.constant 0 : index
    %c0_1 = arith.constant 0 : index
    %0 = vector.load %arg1[%c0, %c0_0, %c0_1] : memref<2x8x32xf32, #tpu.memory_space<vmem>>, vector<2x8x32xf32>
    %1 = vector.shape_cast %0 : vector<2x8x32xf32> to vector<16x32xf32>
    %2 = arith.truncf %1 : vector<16x32xf32> to vector<16x32xbf16>
    %c0_2 = arith.constant 0 : index
    %c0_3 = arith.constant 0 : index
    %3 = vector.load %arg2[%c0_2, %c0_3] : memref<32x96xbf16, #tpu.memory_space<vmem>>, vector<32x96xbf16>
    %cst = arith.constant dense<0.000000e+00> : vector<16x96xf32>
    %4 = tpu.matmul %2, %3, %cst {dimension_numbers = #tpu.dot_dimension_numbers<[1], [0], [0], [1], [0, 0, 1, 1], [], []>} : vector<16x32xbf16>, vector<32x96xbf16>, vector<16x96xf32> -> vector<16x96xf32>
    %c0_4 = arith.constant 0 : index
    %c0_5 = arith.constant 0 : index
    %5 = vector.load %arg3[%c0_4, %c0_5] : memref<1x96xf32, #tpu.memory_space<vmem>>, vector<1x96xf32>
    %6 = vector.broadcast %5 : vector<1x96xf32> to vector<16x96xf32>
    %7 = arith.addf %4, %6 : vector<16x96xf32>
    %8 = arith.truncf %7 : vector<16x96xf32> to vector<16x96xbf16>
    %c0_6 = arith.constant 0 : index
    %c0_7 = arith.constant 0 : index
    %9 = vector.load %arg16[%c0_6, %c0_7] : memref<16x96xbf16, #tpu.memory_space<vmem>>, vector<16x96xbf16>
    tpu.vector_store %arg16[%c0_6, %c0_7], %8 {strides = array<i32>} : memref<16x96xbf16, #tpu.memory_space<vmem>>, vector<16x96xbf16>,
    %c0_i32 = arith.constant 0 : i32
    %c2_i32 = arith.constant 2 : i32
    %10 = arith.addi %c0_i32, %c2_i32 : i32
    %c1_i32 = arith.constant 1 : i32
    scf.for %arg18 = %c0_i32 to %10 step %c1_i32  : i32 {
      %c1_i32_48 = arith.constant 1 : i32
      %84 = arith.muli %arg18, %c1_i32_48 : i32
      %c0_i32_49 = arith.constant 0 : i32
      %85 = arith.addi %c0_i32_49, %84 : i32
      %c8_i32 = arith.constant 8 : i32
      %86 = arith.muli %85, %c8_i32 : i32
      %87 = tpu.assume_multiple %86, 8 : i32
      %cst_50 = arith.constant 0.000000e+00 : f32
      %88 = vector.broadcast %cst_50 : f32 to vector<8x8xf32>
      %89 = arith.index_cast %87 : i32 to index
      %c0_51 = arith.constant 0 : index
      %90 = vector.load %arg16[%89, %c0_51] : memref<16x96xbf16, #tpu.memory_space<vmem>>, vector<8x8xbf16>
      %91 = arith.index_cast %87 : i32 to index
      %c32 = arith.constant 32 : index
      %92 = vector.load %arg16[%91, %c32] : memref<16x96xbf16, #tpu.memory_space<vmem>>, vector<8x8xbf16>
      %93 = arith.index_cast %87 : i32 to index
      %c64 = arith.constant 64 : index
      %94 = vector.load %arg16[%93, %c64] : memref<16x96xbf16, #tpu.memory_space<vmem>>, vector<8x8xbf16>
      %cst_52 = arith.constant dense<0.000000e+00> : vector<8x8xf32>
      %95 = tpu.matmul %90, %92, %cst_52 {dimension_numbers = #tpu.dot_dimension_numbers<[1], [1], [0], [0], [0, 0, 1, 0], [], []>} : vector<8x8xbf16>, vector<8x8xbf16>, vector<8x8xf32> -> vector<8x8xf32>
      %cst_53 = arith.constant 0.353553385 : f32
      %96 = vector.broadcast %cst_53 : f32 to vector<8x8xf32>
      %97 = arith.mulf %95, %96 : vector<8x8xf32>
      %cst_54 = arith.constant dense<0xFF800000> : vector<8xf32>
      %98 = vector.multi_reduction <maximumf>, %97, %cst_54 [1] : vector<8x8xf32> to vector<8xf32>
      %99 = vector.shape_cast %98 : vector<8xf32> to vector<8x1xf32>
      %100 = vector.broadcast %99 : vector<8x1xf32> to vector<8x8xf32>
      %101 = arith.subf %97, %100 : vector<8x8xf32>
      %102 = math.exp %101 : vector<8x8xf32>
      %cst_55 = arith.constant dense<0.000000e+00> : vector<8xf32>
      %103 = vector.multi_reduction <add>, %102, %cst_55 [1] : vector<8x8xf32> to vector<8xf32>
      %104 = vector.shape_cast %103 : vector<8xf32> to vector<8x1xf32>
      %105 = vector.broadcast %104 : vector<8x1xf32> to vector<8x8xf32>
      %106 = arith.divf %102, %105 : vector<8x8xf32>
      %cst_56 = arith.constant 2.500000e-01 : f32
      %107 = vector.broadcast %cst_56 : f32 to vector<8x8xf32>
      %108 = arith.mulf %106, %107 : vector<8x8xf32>
      %109 = arith.addf %88, %108 : vector<8x8xf32>
      %110 = arith.truncf %106 : vector<8x8xf32> to vector<8x8xbf16>
      %cst_57 = arith.constant dense<0.000000e+00> : vector<8x8xf32>
      %111 = tpu.matmul %110, %94, %cst_57 {dimension_numbers = #tpu.dot_dimension_numbers<[1], [0], [0], [1], [0, 0, 1, 1], [], []>} : vector<8x8xbf16>, vector<8x8xbf16>, vector<8x8xf32> -> vector<8x8xf32>
      %112 = arith.truncf %111 : vector<8x8xf32> to vector<8x8xbf16>
      %113 = arith.index_cast %87 : i32 to index
      %c0_58 = arith.constant 0 : index
      %114 = vector.load %arg17[%113, %c0_58] : memref<16x32xbf16, #tpu.memory_space<vmem>>, vector<8x8xbf16>
      tpu.vector_store %arg17[%113, %c0_58], %112 {strides = array<i32>} : memref<16x32xbf16, #tpu.memory_space<vmem>>, vector<8x8xbf16>,
      %115 = arith.index_cast %87 : i32 to index
      %c8 = arith.constant 8 : index
      %116 = vector.load %arg16[%115, %c8] : memref<16x96xbf16, #tpu.memory_space<vmem>>, vector<8x8xbf16>
      %117 = arith.index_cast %87 : i32 to index
      %c40 = arith.constant 40 : index
      %118 = vector.load %arg16[%117, %c40] : memref<16x96xbf16, #tpu.memory_space<vmem>>, vector<8x8xbf16>
      %119 = arith.index_cast %87 : i32 to index
      %c72 = arith.constant 72 : index
      %120 = vector.load %arg16[%119, %c72] : memref<16x96xbf16, #tpu.memory_space<vmem>>, vector<8x8xbf16>
      %cst_59 = arith.constant dense<0.000000e+00> : vector<8x8xf32>
      %121 = tpu.matmul %116, %118, %cst_59 {dimension_numbers = #tpu.dot_dimension_numbers<[1], [1], [0], [0], [0, 0, 1, 0], [], []>} : vector<8x8xbf16>, vector<8x8xbf16>, vector<8x8xf32> -> vector<8x8xf32>
      %cst_60 = arith.constant 0.353553385 : f32
      %122 = vector.broadcast %cst_60 : f32 to vector<8x8xf32>
      %123 = arith.mulf %121, %122 : vector<8x8xf32>
      %cst_61 = arith.constant dense<0xFF800000> : vector<8xf32>
      %124 = vector.multi_reduction <maximumf>, %123, %cst_61 [1] : vector<8x8xf32> to vector<8xf32>
      %125 = vector.shape_cast %124 : vector<8xf32> to vector<8x1xf32>
      %126 = vector.broadcast %125 : vector<8x1xf32> to vector<8x8xf32>
      %127 = arith.subf %123, %126 : vector<8x8xf32>
      %128 = math.exp %127 : vector<8x8xf32>
      %cst_62 = arith.constant dense<0.000000e+00> : vector<8xf32>
      %129 = vector.multi_reduction <add>, %128, %cst_62 [1] : vector<8x8xf32> to vector<8xf32>
      %130 = vector.shape_cast %129 : vector<8xf32> to vector<8x1xf32>
      %131 = vector.broadcast %130 : vector<8x1xf32> to vector<8x8xf32>
      %132 = arith.divf %128, %131 : vector<8x8xf32>
      %cst_63 = arith.constant 2.500000e-01 : f32
      %133 = vector.broadcast %cst_63 : f32 to vector<8x8xf32>
      %134 = arith.mulf %132, %133 : vector<8x8xf32>
      %135 = arith.addf %109, %134 : vector<8x8xf32>
      %136 = arith.truncf %132 : vector<8x8xf32> to vector<8x8xbf16>
      %cst_64 = arith.constant dense<0.000000e+00> : vector<8x8xf32>
      %137 = tpu.matmul %136, %120, %cst_64 {dimension_numbers = #tpu.dot_dimension_numbers<[1], [0], [0], [1], [0, 0, 1, 1], [], []>} : vector<8x8xbf16>, vector<8x8xbf16>, vector<8x8xf32> -> vector<8x8xf32>
      %138 = arith.truncf %137 : vector<8x8xf32> to vector<8x8xbf16>
      %139 = arith.index_cast %87 : i32 to index
      %c8_65 = arith.constant 8 : index
      %140 = vector.load %arg17[%139, %c8_65] : memref<16x32xbf16, #tpu.memory_space<vmem>>, vector<8x8xbf16>
      tpu.vector_store %arg17[%139, %c8_65], %138 {strides = array<i32>} : memref<16x32xbf16, #tpu.memory_space<vmem>>, vector<8x8xbf16>,
      %141 = arith.index_cast %87 : i32 to index
      %c16 = arith.constant 16 : index
      %142 = vector.load %arg16[%141, %c16] : memref<16x96xbf16, #tpu.memory_space<vmem>>, vector<8x8xbf16>
      %143 = arith.index_cast %87 : i32 to index
      %c48 = arith.constant 48 : index
      %144 = vector.load %arg16[%143, %c48] : memref<16x96xbf16, #tpu.memory_space<vmem>>, vector<8x8xbf16>
      %145 = arith.index_cast %87 : i32 to index
      %c80 = arith.constant 80 : index
      %146 = vector.load %arg16[%145, %c80] : memref<16x96xbf16, #tpu.memory_space<vmem>>, vector<8x8xbf16>
      %cst_66 = arith.constant dense<0.000000e+00> : vector<8x8xf32>
      %147 = tpu.matmul %142, %144, %cst_66 {dimension_numbers = #tpu.dot_dimension_numbers<[1], [1], [0], [0], [0, 0, 1, 0], [], []>} : vector<8x8xbf16>, vector<8x8xbf16>, vector<8x8xf32> -> vector<8x8xf32>
      %cst_67 = arith.constant 0.353553385 : f32
      %148 = vector.broadcast %cst_67 : f32 to vector<8x8xf32>
      %149 = arith.mulf %147, %148 : vector<8x8xf32>
      %cst_68 = arith.constant dense<0xFF800000> : vector<8xf32>
      %150 = vector.multi_reduction <maximumf>, %149, %cst_68 [1] : vector<8x8xf32> to vector<8xf32>
      %151 = vector.shape_cast %150 : vector<8xf32> to vector<8x1xf32>
      %152 = vector.broadcast %151 : vector<8x1xf32> to vector<8x8xf32>
      %153 = arith.subf %149, %152 : vector<8x8xf32>
      %154 = math.exp %153 : vector<8x8xf32>
      %cst_69 = arith.constant dense<0.000000e+00> : vector<8xf32>
      %155 = vector.multi_reduction <add>, %154, %cst_69 [1] : vector<8x8xf32> to vector<8xf32>
      %156 = vector.shape_cast %155 : vector<8xf32> to vector<8x1xf32>
      %157 = vector.broadcast %156 : vector<8x1xf32> to vector<8x8xf32>
      %158 = arith.divf %154, %157 : vector<8x8xf32>
      %cst_70 = arith.constant 2.500000e-01 : f32
      %159 = vector.broadcast %cst_70 : f32 to vector<8x8xf32>
      %160 = arith.mulf %158, %159 : vector<8x8xf32>
      %161 = arith.addf %135, %160 : vector<8x8xf32>
      %162 = arith.truncf %158 : vector<8x8xf32> to vector<8x8xbf16>
      %cst_71 = arith.constant dense<0.000000e+00> : vector<8x8xf32>
      %163 = tpu.matmul %162, %146, %cst_71 {dimension_numbers = #tpu.dot_dimension_numbers<[1], [0], [0], [1], [0, 0, 1, 1], [], []>} : vector<8x8xbf16>, vector<8x8xbf16>, vector<8x8xf32> -> vector<8x8xf32>
      %164 = arith.truncf %163 : vector<8x8xf32> to vector<8x8xbf16>
      %165 = arith.index_cast %87 : i32 to index
      %c16_72 = arith.constant 16 : index
      %166 = vector.load %arg17[%165, %c16_72] : memref<16x32xbf16, #tpu.memory_space<vmem>>, vector<8x8xbf16>
      tpu.vector_store %arg17[%165, %c16_72], %164 {strides = array<i32>} : memref<16x32xbf16, #tpu.memory_space<vmem>>, vector<8x8xbf16>,
      %167 = arith.index_cast %87 : i32 to index
      %c24 = arith.constant 24 : index
      %168 = vector.load %arg16[%167, %c24] : memref<16x96xbf16, #tpu.memory_space<vmem>>, vector<8x8xbf16>
      %169 = arith.index_cast %87 : i32 to index
      %c56 = arith.constant 56 : index
      %170 = vector.load %arg16[%169, %c56] : memref<16x96xbf16, #tpu.memory_space<vmem>>, vector<8x8xbf16>
      %171 = arith.index_cast %87 : i32 to index
      %c88 = arith.constant 88 : index
      %172 = vector.load %arg16[%171, %c88] : memref<16x96xbf16, #tpu.memory_space<vmem>>, vector<8x8xbf16>
      %cst_73 = arith.constant dense<0.000000e+00> : vector<8x8xf32>
      %173 = tpu.matmul %168, %170, %cst_73 {dimension_numbers = #tpu.dot_dimension_numbers<[1], [1], [0], [0], [0, 0, 1, 0], [], []>} : vector<8x8xbf16>, vector<8x8xbf16>, vector<8x8xf32> -> vector<8x8xf32>
      %cst_74 = arith.constant 0.353553385 : f32
      %174 = vector.broadcast %cst_74 : f32 to vector<8x8xf32>
      %175 = arith.mulf %173, %174 : vector<8x8xf32>
      %cst_75 = arith.constant dense<0xFF800000> : vector<8xf32>
      %176 = vector.multi_reduction <maximumf>, %175, %cst_75 [1] : vector<8x8xf32> to vector<8xf32>
      %177 = vector.shape_cast %176 : vector<8xf32> to vector<8x1xf32>
      %178 = vector.broadcast %177 : vector<8x1xf32> to vector<8x8xf32>
      %179 = arith.subf %175, %178 : vector<8x8xf32>
      %180 = math.exp %179 : vector<8x8xf32>
      %cst_76 = arith.constant dense<0.000000e+00> : vector<8xf32>
      %181 = vector.multi_reduction <add>, %180, %cst_76 [1] : vector<8x8xf32> to vector<8xf32>
      %182 = vector.shape_cast %181 : vector<8xf32> to vector<8x1xf32>
      %183 = vector.broadcast %182 : vector<8x1xf32> to vector<8x8xf32>
      %184 = arith.divf %180, %183 : vector<8x8xf32>
      %cst_77 = arith.constant 2.500000e-01 : f32
      %185 = vector.broadcast %cst_77 : f32 to vector<8x8xf32>
      %186 = arith.mulf %184, %185 : vector<8x8xf32>
      %187 = arith.addf %161, %186 : vector<8x8xf32>
      %188 = arith.truncf %184 : vector<8x8xf32> to vector<8x8xbf16>
      %cst_78 = arith.constant dense<0.000000e+00> : vector<8x8xf32>
      %189 = tpu.matmul %188, %172, %cst_78 {dimension_numbers = #tpu.dot_dimension_numbers<[1], [0], [0], [1], [0, 0, 1, 1], [], []>} : vector<8x8xbf16>, vector<8x8xbf16>, vector<8x8xf32> -> vector<8x8xf32>
      %190 = arith.truncf %189 : vector<8x8xf32> to vector<8x8xbf16>
      %191 = arith.index_cast %87 : i32 to index
      %c24_79 = arith.constant 24 : index
      %192 = vector.load %arg17[%191, %c24_79] : memref<16x32xbf16, #tpu.memory_space<vmem>>, vector<8x8xbf16>
      tpu.vector_store %arg17[%191, %c24_79], %190 {strides = array<i32>} : memref<16x32xbf16, #tpu.memory_space<vmem>>, vector<8x8xbf16>,
      %193 = arith.index_cast %85 : i32 to index
      %c0_80 = arith.constant 0 : index
      %c0_81 = arith.constant 0 : index
      %194 = vector.load %arg15[%193, %c0_80, %c0_81] : memref<2x8x8xf32, #tpu.memory_space<vmem>>, vector<1x8x8xf32>
      %195 = vector.shape_cast %194 : vector<1x8x8xf32> to vector<8x8xf32>
      %196 = vector.shape_cast %187 : vector<8x8xf32> to vector<1x8x8xf32>
      tpu.vector_store %arg15[%193, %c0_80, %c0_81], %196 {strides = array<i32>} : memref<2x8x8xf32, #tpu.memory_space<vmem>>, vector<1x8x8xf32>,
    }
    %c2_i32_8 = arith.constant 2 : i32
    %c0_9 = arith.constant 0 : index
    %c0_10 = arith.constant 0 : index
    %11 = vector.load %arg17[%c0_9, %c0_10] : memref<16x32xbf16, #tpu.memory_space<vmem>>, vector<16x32xbf16>
    %c0_11 = arith.constant 0 : index
    %c0_12 = arith.constant 0 : index
    %12 = vector.load %arg4[%c0_11, %c0_12] : memref<32x32xbf16, #tpu.memory_space<vmem>>, vector<32x32xbf16>
    %cst_13 = arith.constant dense<0.000000e+00> : vector<16x32xf32>
    %13 = tpu.matmul %11, %12, %cst_13 {dimension_numbers = #tpu.dot_dimension_numbers<[1], [0], [0], [1], [0, 0, 1, 1], [], []>} : vector<16x32xbf16>, vector<32x32xbf16>, vector<16x32xf32> -> vector<16x32xf32>
    %c0_14 = arith.constant 0 : index
    %c0_15 = arith.constant 0 : index
    %14 = vector.load %arg5[%c0_14, %c0_15] : memref<1x32xf32, #tpu.memory_space<vmem>>, vector<1x32xf32>
    %15 = vector.broadcast %14 : vector<1x32xf32> to vector<16x32xf32>
    %16 = arith.addf %13, %15 : vector<16x32xf32>
    %17 = arith.addf %1, %16 : vector<16x32xf32>
    %c0_16 = arith.constant 0 : index
    %c0_17 = arith.constant 0 : index
    %18 = vector.load %arg10[%c0_16, %c0_17] : memref<1x32xf32, #tpu.memory_space<vmem>>, vector<1x32xf32>
    %c0_18 = arith.constant 0 : index
    %c0_19 = arith.constant 0 : index
    %19 = vector.load %arg11[%c0_18, %c0_19] : memref<1x32xf32, #tpu.memory_space<vmem>>, vector<1x32xf32>
    %cst_20 = arith.constant dense<0.000000e+00> : vector<16xf32>
    %20 = vector.multi_reduction <add>, %17, %cst_20 [1] : vector<16x32xf32> to vector<16xf32>
    %21 = vector.shape_cast %20 : vector<16xf32> to vector<16x1xf32>
    %cst_21 = arith.constant 3.200000e+01 : f32
    %22 = vector.broadcast %cst_21 : f32 to vector<16x1xf32>
    %23 = arith.divf %21, %22 : vector<16x1xf32>
    %24 = vector.broadcast %23 : vector<16x1xf32> to vector<16x32xf32>
    %25 = arith.subf %17, %24 : vector<16x32xf32>
    %26 = arith.mulf %25, %25 : vector<16x32xf32>
    %cst_22 = arith.constant dense<0.000000e+00> : vector<16xf32>
    %27 = vector.multi_reduction <add>, %26, %cst_22 [1] : vector<16x32xf32> to vector<16xf32>
    %28 = vector.shape_cast %27 : vector<16xf32> to vector<16x1xf32>
    %cst_23 = arith.constant 3.200000e+01 : f32
    %29 = vector.broadcast %cst_23 : f32 to vector<16x1xf32>
    %30 = arith.divf %28, %29 : vector<16x1xf32>
    %31 = vector.broadcast %23 : vector<16x1xf32> to vector<16x32xf32>
    %32 = arith.subf %17, %31 : vector<16x32xf32>
    %cst_24 = arith.constant 9.99999974E-6 : f32
    %33 = vector.broadcast %cst_24 : f32 to vector<16x1xf32>
    %34 = arith.addf %30, %33 : vector<16x1xf32>
    %35 = math.rsqrt %34 : vector<16x1xf32>
    %36 = vector.broadcast %35 : vector<16x1xf32> to vector<16x32xf32>
    %37 = arith.mulf %32, %36 : vector<16x32xf32>
    %38 = vector.broadcast %18 : vector<1x32xf32> to vector<16x32xf32>
    %39 = arith.mulf %37, %38 : vector<16x32xf32>
    %40 = vector.broadcast %19 : vector<1x32xf32> to vector<16x32xf32>
    %41 = arith.addf %39, %40 : vector<16x32xf32>
    %42 = arith.truncf %41 : vector<16x32xf32> to vector<16x32xbf16>
    %c0_25 = arith.constant 0 : index
    %c0_26 = arith.constant 0 : index
    %43 = vector.load %arg6[%c0_25, %c0_26] : memref<32x64xbf16, #tpu.memory_space<vmem>>, vector<32x64xbf16>
    %cst_27 = arith.constant dense<0.000000e+00> : vector<16x64xf32>
    %44 = tpu.matmul %42, %43, %cst_27 {dimension_numbers = #tpu.dot_dimension_numbers<[1], [0], [0], [1], [0, 0, 1, 1], [], []>} : vector<16x32xbf16>, vector<32x64xbf16>, vector<16x64xf32> -> vector<16x64xf32>
    %c0_28 = arith.constant 0 : index
    %c0_29 = arith.constant 0 : index
    %45 = vector.load %arg7[%c0_28, %c0_29] : memref<1x64xf32, #tpu.memory_space<vmem>>, vector<1x64xf32>
    %46 = vector.broadcast %45 : vector<1x64xf32> to vector<16x64xf32>
    %47 = arith.addf %44, %46 : vector<16x64xf32>
    %cst_30 = arith.constant 0.000000e+00 : f32
    %48 = vector.broadcast %cst_30 : f32 to vector<16x64xf32>
    %49 = arith.maximumf %47, %48 : vector<16x64xf32>
    %50 = arith.truncf %49 : vector<16x64xf32> to vector<16x64xbf16>
    %c0_31 = arith.constant 0 : index
    %c0_32 = arith.constant 0 : index
    %51 = vector.load %arg8[%c0_31, %c0_32] : memref<64x32xbf16, #tpu.memory_space<vmem>>, vector<64x32xbf16>
    %cst_33 = arith.constant dense<0.000000e+00> : vector<16x32xf32>
    %52 = tpu.matmul %50, %51, %cst_33 {dimension_numbers = #tpu.dot_dimension_numbers<[1], [0], [0], [1], [0, 0, 1, 1], [], []>} : vector<16x64xbf16>, vector<64x32xbf16>, vector<16x32xf32> -> vector<16x32xf32>
    %c0_34 = arith.constant 0 : index
    %c0_35 = arith.constant 0 : index
    %53 = vector.load %arg9[%c0_34, %c0_35] : memref<1x32xf32, #tpu.memory_space<vmem>>, vector<1x32xf32>
    %54 = vector.broadcast %53 : vector<1x32xf32> to vector<16x32xf32>
    %55 = arith.addf %52, %54 : vector<16x32xf32>
    %56 = arith.addf %41, %55 : vector<16x32xf32>
    %c0_36 = arith.constant 0 : index
    %c0_37 = arith.constant 0 : index
    %57 = vector.load %arg12[%c0_36, %c0_37] : memref<1x32xf32, #tpu.memory_space<vmem>>, vector<1x32xf32>
    %c0_38 = arith.constant 0 : index
    %c0_39 = arith.constant 0 : index
    %58 = vector.load %arg13[%c0_38, %c0_39] : memref<1x32xf32, #tpu.memory_space<vmem>>, vector<1x32xf32>
    %cst_40 = arith.constant dense<0.000000e+00> : vector<16xf32>
    %59 = vector.multi_reduction <add>, %56, %cst_40 [1] : vector<16x32xf32> to vector<16xf32>
    %60 = vector.shape_cast %59 : vector<16xf32> to vector<16x1xf32>
    %cst_41 = arith.constant 3.200000e+01 : f32
    %61 = vector.broadcast %cst_41 : f32 to vector<16x1xf32>
    %62 = arith.divf %60, %61 : vector<16x1xf32>
    %63 = vector.broadcast %62 : vector<16x1xf32> to vector<16x32xf32>
    %64 = arith.subf %56, %63 : vector<16x32xf32>
    %65 = arith.mulf %64, %64 : vector<16x32xf32>
    %cst_42 = arith.constant dense<0.000000e+00> : vector<16xf32>
    %66 = vector.multi_reduction <add>, %65, %cst_42 [1] : vector<16x32xf32> to vector<16xf32>
    %67 = vector.shape_cast %66 : vector<16xf32> to vector<16x1xf32>
    %cst_43 = arith.constant 3.200000e+01 : f32
    %68 = vector.broadcast %cst_43 : f32 to vector<16x1xf32>
    %69 = arith.divf %67, %68 : vector<16x1xf32>
    %70 = vector.broadcast %62 : vector<16x1xf32> to vector<16x32xf32>
    %71 = arith.subf %56, %70 : vector<16x32xf32>
    %cst_44 = arith.constant 9.99999974E-6 : f32
    %72 = vector.broadcast %cst_44 : f32 to vector<16x1xf32>
    %73 = arith.addf %69, %72 : vector<16x1xf32>
    %74 = math.rsqrt %73 : vector<16x1xf32>
    %75 = vector.broadcast %74 : vector<16x1xf32> to vector<16x32xf32>
    %76 = arith.mulf %71, %75 : vector<16x32xf32>
    %77 = vector.broadcast %57 : vector<1x32xf32> to vector<16x32xf32>
    %78 = arith.mulf %76, %77 : vector<16x32xf32>
    %79 = vector.broadcast %58 : vector<1x32xf32> to vector<16x32xf32>
    %80 = arith.addf %78, %79 : vector<16x32xf32>
    %81 = vector.shape_cast %80 : vector<16x32xf32> to vector<2x8x32xf32>
    %82 = arith.truncf %81 : vector<2x8x32xf32> to vector<2x8x32xbf16>
    %c0_45 = arith.constant 0 : index
    %c0_46 = arith.constant 0 : index
    %c0_47 = arith.constant 0 : index
    %83 = vector.load %arg14[%c0_45, %c0_46, %c0_47] : memref<2x8x32xbf16, #tpu.memory_space<vmem>>, vector<2x8x32xbf16>
    tpu.vector_store %arg14[%c0_45, %c0_46, %c0_47], %82 {strides = array<i32>} : memref<2x8x32xbf16, #tpu.memory_space<vmem>>, vector<2x8x32xbf16>,
    return
  }
  func.func @transform_0(%arg0: i32) -> (i32, i32, i32) {
    %c0_i32 = arith.constant 0 : i32
    %c0_i32_0 = arith.constant 0 : i32
    %c0_i32_1 = arith.constant 0 : i32
    return %arg0, %c0_i32, %c0_i32_0 : i32, i32, i32
  }
  func.func @transform_1(%arg0: i32) -> (i32, i32) {
    %c0_i32 = arith.constant 0 : i32
    %c0_i32_0 = arith.constant 0 : i32
    %c0_i32_1 = arith.constant 0 : i32
    return %c0_i32, %c0_i32_0 : i32, i32
  }
  func.func @transform_2(%arg0: i32) -> (i32, i32) {
    %c0_i32 = arith.constant 0 : i32
    %c0_i32_0 = arith.constant 0 : i32
    %c0_i32_1 = arith.constant 0 : i32
    return %c0_i32, %c0_i32_0 : i32, i32
  }
  func.func @transform_3(%arg0: i32) -> (i32, i32) {
    %c0_i32 = arith.constant 0 : i32
    %c0_i32_0 = arith.constant 0 : i32
    %c0_i32_1 = arith.constant 0 : i32
    return %c0_i32, %c0_i32_0 : i32, i32
  }
  func.func @transform_4(%arg0: i32) -> (i32, i32) {
    %c0_i32 = arith.constant 0 : i32
    %c0_i32_0 = arith.constant 0 : i32
    %c0_i32_1 = arith.constant 0 : i32
    return %c0_i32, %c0_i32_0 : i32, i32
  }
  func.func @transform_5(%arg0: i32) -> (i32, i32) {
    %c0_i32 = arith.constant 0 : i32
    %c0_i32_0 = arith.constant 0 : i32
    %c0_i32_1 = arith.constant 0 : i32
    return %c0_i32, %c0_i32_0 : i32, i32
  }
  func.func @transform_6(%arg0: i32) -> (i32, i32) {
    %c0_i32 = arith.constant 0 : i32
    %c0_i32_0 = arith.constant 0 : i32
    %c0_i32_1 = arith.constant 0 : i32
    return %c0_i32, %c0_i32_0 : i32, i32
  }
  func.func @transform_7(%arg0: i32) -> (i32, i32) {
    %c0_i32 = arith.constant 0 : i32
    %c0_i32_0 = arith.constant 0 : i32
    %c0_i32_1 = arith.constant 0 : i32
    return %c0_i32, %c0_i32_0 : i32, i32
  }
  func.func @transform_8(%arg0: i32) -> (i32, i32) {
    %c0_i32 = arith.constant 0 : i32
    %c0_i32_0 = arith.constant 0 : i32
    %c0_i32_1 = arith.constant 0 : i32
    return %c0_i32, %c0_i32_0 : i32, i32
  }
  func.func @transform_9(%arg0: i32) -> (i32, i32) {
    %c0_i32 = arith.constant 0 : i32
    %c0_i32_0 = arith.constant 0 : i32
    %c0_i32_1 = arith.constant 0 : i32
    return %c0_i32, %c0_i32_0 : i32, i32
  }
  func.func @transform_10(%arg0: i32) -> (i32, i32) {
    %c0_i32 = arith.constant 0 : i32
    %c0_i32_0 = arith.constant 0 : i32
    %c0_i32_1 = arith.constant 0 : i32
    return %c0_i32, %c0_i32_0 : i32, i32
  }
  func.func @transform_11(%arg0: i32) -> (i32, i32) {
    %c0_i32 = arith.constant 0 : i32
    %c0_i32_0 = arith.constant 0 : i32
    %c0_i32_1 = arith.constant 0 : i32
    return %c0_i32, %c0_i32_0 : i32, i32
  }
  func.func @transform_12(%arg0: i32) -> (i32, i32) {
    %c0_i32 = arith.constant 0 : i32
    %c0_i32_0 = arith.constant 0 : i32
    %c0_i32_1 = arith.constant 0 : i32
    return %c0_i32, %c0_i32_0 : i32, i32
  }
  func.func @transform_13(%arg0: i32) -> (i32, i32, i32) {
    %c0_i32 = arith.constant 0 : i32
    %c0_i32_0 = arith.constant 0 : i32
    %c0_i32_1 = arith.constant 0 : i32
    return %arg0, %c0_i32, %c0_i32_0 : i32, i32, i32
  }
  func.func @transform_14(%arg0: i32) -> (i32, i32, i32) {
    %c0_i32 = arith.constant 0 : i32
    %c0_i32_0 = arith.constant 0 : i32
    %c0_i32_1 = arith.constant 0 : i32
    return %arg0, %c0_i32, %c0_i32_0 : i32, i32, i32
  }
}

module attributes {stable_mosaic.version = 11 : i64} {
  func.func @encoder_layer_kernel(%arg0: i32, %arg1: memref<2x8x32xf32, #tpu.memory_space<vmem>>, %arg2: memref<32x96xbf16, #tpu.memory_space<vmem>>, %arg3: memref<1x96xf32, #tpu.memory_space<vmem>>, %arg4: memref<32x32xbf16, #tpu.memory_space<vmem>>, %arg5: memref<1x32xf32, #tpu.memory_space<vmem>>, %arg6: memref<32x64xbf16, #tpu.memory_space<vmem>>, %arg7: memref<1x64xf32, #tpu.memory_space<vmem>>, %arg8: memref<64x32xbf16, #tpu.memory_space<vmem>>, %arg9: memref<1x32xf32, #tpu.memory_space<vmem>>, %arg10: memref<1x32xf32, #tpu.memory_space<vmem>>, %arg11: memref<1x32xf32, #tpu.memory_space<vmem>>, %arg12: memref<1x32xf32, #tpu.memory_space<vmem>>, %arg13: memref<1x32xf32, #tpu.memory_space<vmem>>, %arg14: memref<2x8x32xbf16, #tpu.memory_space<vmem>>, %arg15: memref<2x8x8xf32, #tpu.memory_space<vmem>>, %arg16: memref<16x96xbf16, #tpu.memory_space<vmem>>, %arg17: memref<16x32xbf16, #tpu.memory_space<vmem>>) attributes {dimension_semantics = [#tpu.dimension_semantics<parallel>], iteration_bounds = array<i64: 1>, scalar_prefetch = 0 : i64, scratch_operands = 2 : i64, tpu.core_type = #tpu.core_type<tc>, window_params = [{transform_indices = @transform_0, window_bounds = array<i64: 2, 8, 32>}, {pipeline_mode = #tpu.pipeline_mode<synchronous>, transform_indices = @transform_1, window_bounds = array<i64: 32, 96>}, {pipeline_mode = #tpu.pipeline_mode<synchronous>, transform_indices = @transform_2, window_bounds = array<i64: 1, 96>}, {pipeline_mode = #tpu.pipeline_mode<synchronous>, transform_indices = @transform_3, window_bounds = array<i64: 32, 32>}, {pipeline_mode = #tpu.pipeline_mode<synchronous>, transform_indices = @transform_4, window_bounds = array<i64: 1, 32>}, {pipeline_mode = #tpu.pipeline_mode<synchronous>, transform_indices = @transform_5, window_bounds = array<i64: 32, 64>}, {pipeline_mode = #tpu.pipeline_mode<synchronous>, transform_indices = @transform_6, window_bounds = array<i64: 1, 64>}, {pipeline_mode = #tpu.pipeline_mode<synchronous>, transform_indices = @transform_7, window_bounds = array<i64: 64, 32>}, {pipeline_mode = #tpu.pipeline_mode<synchronous>, transform_indices = @transform_8, window_bounds = array<i64: 1, 32>}, {pipeline_mode = #tpu.pipeline_mode<synchronous>, transform_indices = @transform_9, window_bounds = array<i64: 1, 32>}, {pipeline_mode = #tpu.pipeline_mode<synchronous>, transform_indices = @transform_10, window_bounds = array<i64: 1, 32>}, {pipeline_mode = #tpu.pipeline_mode<synchronous>, transform_indices = @transform_11, window_bounds = array<i64: 1, 32>}, {pipeline_mode = #tpu.pipeline_mode<synchronous>, transform_indices = @transform_12, window_bounds = array<i64: 1, 32>}, {transform_indices = @transform_13, window_bounds = array<i64: 2, 8, 32>}, {transform_indices = @transform_14, window_bounds = array<i64: 2, 8, 8>}]} {
    %c0 = arith.constant 0 : index
    %c0_0 = arith.constant 0 : index
    %c0_1 = arith.constant 0 : index
    %0 = vector.load %arg1[%c0, %c0_0, %c0_1] : memref<2x8x32xf32, #tpu.memory_space<vmem>>, vector<2x8x32xf32>
    %1 = vector.shape_cast %0 : vector<2x8x32xf32> to vector<16x32xf32>
    %2 = arith.truncf %1 : vector<16x32xf32> to vector<16x32xbf16>
    %c0_2 = arith.constant 0 : index
    %c0_3 = arith.constant 0 : index
    %3 = vector.load %arg2[%c0_2, %c0_3] : memref<32x96xbf16, #tpu.memory_space<vmem>>, vector<32x96xbf16>
    %cst = arith.constant dense<0.000000e+00> : vector<16x96xf32>
    %4 = tpu.matmul %2, %3, %cst {dimension_numbers = #tpu.dot_dimension_numbers<[1], [0], [0], [1], [0, 0, 1, 1], [], []>} : vector<16x32xbf16>, vector<32x96xbf16>, vector<16x96xf32> -> vector<16x96xf32>
    %c0_4 = arith.constant 0 : index
    %c0_5 = arith.constant 0 : index
    %5 = vector.load %arg3[%c0_4, %c0_5] : memref<1x96xf32, #tpu.memory_space<vmem>>, vector<1x96xf32>
    %6 = vector.broadcast %5 : vector<1x96xf32> to vector<16x96xf32>
    %7 = arith.addf %4, %6 : vector<16x96xf32>
    %8 = arith.truncf %7 : vector<16x96xf32> to vector<16x96xbf16>
    %c0_6 = arith.constant 0 : index
    %c0_7 = arith.constant 0 : index
    %9 = vector.load %arg16[%c0_6, %c0_7] : memref<16x96xbf16, #tpu.memory_space<vmem>>, vector<16x96xbf16>
    tpu.vector_store %arg16[%c0_6, %c0_7], %8 {strides = array<i32>} : memref<16x96xbf16, #tpu.memory_space<vmem>>, vector<16x96xbf16>,
    %c0_i32 = arith.constant 0 : i32
    %c2_i32 = arith.constant 2 : i32
    %10 = arith.addi %c0_i32, %c2_i32 : i32
    %c1_i32 = arith.constant 1 : i32
    scf.for %arg18 = %c0_i32 to %10 step %c1_i32  : i32 {
      %c1_i32_48 = arith.constant 1 : i32
      %84 = arith.muli %arg18, %c1_i32_48 : i32
      %c0_i32_49 = arith.constant 0 : i32
      %85 = arith.addi %c0_i32_49, %84 : i32
      %c8_i32 = arith.constant 8 : i32
      %86 = arith.muli %85, %c8_i32 : i32
      %87 = tpu.assume_multiple %86, 8 : i32
      %cst_50 = arith.constant 0.000000e+00 : f32
      %88 = vector.broadcast %cst_50 : f32 to vector<8x8xf32>
      %89 = arith.index_cast %87 : i32 to index
      %c0_51 = arith.constant 0 : index
      %90 = vector.load %arg16[%89, %c0_51] : memref<16x96xbf16, #tpu.memory_space<vmem>>, vector<8x8xbf16>
      %91 = arith.index_cast %87 : i32 to index
      %c32 = arith.constant 32 : index
      %92 = vector.load %arg16[%91, %c32] : memref<16x96xbf16, #tpu.memory_space<vmem>>, vector<8x8xbf16>
      %93 = arith.index_cast %87 : i32 to index
      %c64 = arith.constant 64 : index
      %94 = vector.load %arg16[%93, %c64] : memref<16x96xbf16, #tpu.memory_space<vmem>>, vector<8x8xbf16>
      %cst_52 = arith.constant dense<0.000000e+00> : vector<8x8xf32>
      %95 = tpu.matmul %90, %92, %cst_52 {dimension_numbers = #tpu.dot_dimension_numbers<[1], [1], [0], [0], [0, 0, 1, 0], [], []>} : vector<8x8xbf16>, vector<8x8xbf16>, vector<8x8xf32> -> vector<8x8xf32>
      %cst_53 = arith.constant 0.353553385 : f32
      %96 = vector.broadcast %cst_53 : f32 to vector<8x8xf32>
      %97 = arith.mulf %95, %96 : vector<8x8xf32>
      %cst_54 = arith.constant dense<0xFF800000> : vector<8xf32>
      %98 = vector.multi_reduction <maximumf>, %97, %cst_54 [1] : vector<8x8xf32> to vector<8xf32>
      %99 = vector.shape_cast %98 : vector<8xf32> to vector<8x1xf32>
      %100 = vector.broadcast %99 : vector<8x1xf32> to vector<8x8xf32>
      %101 = arith.subf %97, %100 : vector<8x8xf32>
      %102 = math.exp %101 : vector<8x8xf32>
      %cst_55 = arith.constant dense<0.000000e+00> : vector<8xf32>
      %103 = vector.multi_reduction <add>, %102, %cst_55 [1] : vector<8x8xf32> to vector<8xf32>
      %104 = vector.shape_cast %103 : vector<8xf32> to vector<8x1xf32>
      %105 = vector.broadcast %104 : vector<8x1xf32> to vector<8x8xf32>
      %106 = arith.divf %102, %105 : vector<8x8xf32>
      %cst_56 = arith.constant 2.500000e-01 : f32
      %107 = vector.broadcast %cst_56 : f32 to vector<8x8xf32>
      %108 = arith.mulf %106, %107 : vector<8x8xf32>
      %109 = arith.addf %88, %108 : vector<8x8xf32>
      %110 = arith.truncf %106 : vector<8x8xf32> to vector<8x8xbf16>
      %cst_57 = arith.constant dense<0.000000e+00> : vector<8x8xf32>
      %111 = tpu.matmul %110, %94, %cst_57 {dimension_numbers = #tpu.dot_dimension_numbers<[1], [0], [0], [1], [0, 0, 1, 1], [], []>} : vector<8x8xbf16>, vector<8x8xbf16>, vector<8x8xf32> -> vector<8x8xf32>
      %112 = arith.truncf %111 : vector<8x8xf32> to vector<8x8xbf16>
      %113 = arith.index_cast %87 : i32 to index
      %c0_58 = arith.constant 0 : index
      %114 = vector.load %arg17[%113, %c0_58] : memref<16x32xbf16, #tpu.memory_space<vmem>>, vector<8x8xbf16>
      tpu.vector_store %arg17[%113, %c0_58], %112 {strides = array<i32>} : memref<16x32xbf16, #tpu.memory_space<vmem>>, vector<8x8xbf16>,
      %115 = arith.index_cast %87 : i32 to index
      %c8 = arith.constant 8 : index
      %116 = vector.load %arg16[%115, %c8] : memref<16x96xbf16, #tpu.memory_space<vmem>>, vector<8x8xbf16>
      %117 = arith.index_cast %87 : i32 to index
      %c40 = arith.constant 40 : index
      %118 = vector.load %arg16[%117, %c40] : memref<16x96xbf16, #tpu.memory_space<vmem>>, vector<8x8xbf16>
      %119 = arith.index_cast %87 : i32 to index
      %c72 = arith.constant 72 : index
      %120 = vector.load %arg16[%119, %c72] : memref<16x96xbf16, #tpu.memory_space<vmem>>, vector<8x8xbf16>
      %cst_59 = arith.constant dense<0.000000e+00> : vector<8x8xf32>
      %121 = tpu.matmul %116, %118, %cst_59 {dimension_numbers = #tpu.dot_dimension_numbers<[1], [1], [0], [0], [0, 0, 1, 0], [], []>} : vector<8x8xbf16>, vector<8x8xbf16>, vector<8x8xf32> -> vector<8x8xf32>
      %cst_60 = arith.constant 0.353553385 : f32
      %122 = vector.broadcast %cst_60 : f32 to vector<8x8xf32>
      %123 = arith.mulf %121, %122 : vector<8x8xf32>
      %cst_61 = arith.constant dense<0xFF800000> : vector<8xf32>
      %124 = vector.multi_reduction <maximumf>, %123, %cst_61 [1] : vector<8x8xf32> to vector<8xf32>
      %125 = vector.shape_cast %124 : vector<8xf32> to vector<8x1xf32>
      %126 = vector.broadcast %125 : vector<8x1xf32> to vector<8x8xf32>
      %127 = arith.subf %123, %126 : vector<8x8xf32>
      %128 = math.exp %127 : vector<8x8xf32>
      %cst_62 = arith.constant dense<0.000000e+00> : vector<8xf32>
      %129 = vector.multi_reduction <add>, %128, %cst_62 [1] : vector<8x8xf32> to vector<8xf32>
      %130 = vector.shape_cast %129 : vector<8xf32> to vector<8x1xf32>
      %131 = vector.broadcast %130 : vector<8x1xf32> to vector<8x8xf32>
      %132 = arith.divf %128, %131 : vector<8x8xf32>
      %cst_63 = arith.constant 2.500000e-01 : f32
      %133 = vector.broadcast %cst_63 : f32 to vector<8x8xf32>
      %134 = arith.mulf %132, %133 : vector<8x8xf32>
      %135 = arith.addf %109, %134 : vector<8x8xf32>
      %136 = arith.truncf %132 : vector<8x8xf32> to vector<8x8xbf16>
      %cst_64 = arith.constant dense<0.000000e+00> : vector<8x8xf32>
      %137 = tpu.matmul %136, %120, %cst_64 {dimension_numbers = #tpu.dot_dimension_numbers<[1], [0], [0], [1], [0, 0, 1, 1], [], []>} : vector<8x8xbf16>, vector<8x8xbf16>, vector<8x8xf32> -> vector<8x8xf32>
      %138 = arith.truncf %137 : vector<8x8xf32> to vector<8x8xbf16>
      %139 = arith.index_cast %87 : i32 to index
      %c8_65 = arith.constant 8 : index
      %140 = vector.load %arg17[%139, %c8_65] : memref<16x32xbf16, #tpu.memory_space<vmem>>, vector<8x8xbf16>
      tpu.vector_store %arg17[%139, %c8_65], %138 {strides = array<i32>} : memref<16x32xbf16, #tpu.memory_space<vmem>>, vector<8x8xbf16>,
      %141 = arith.index_cast %87 : i32 to index
      %c16 = arith.constant 16 : index
      %142 = vector.load %arg16[%141, %c16] : memref<16x96xbf16, #tpu.memory_space<vmem>>, vector<8x8xbf16>
      %143 = arith.index_cast %87 : i32 to index
      %c48 = arith.constant 48 : index
      %144 = vector.load %arg16[%143, %c48] : memref<16x96xbf16, #tpu.memory_space<vmem>>, vector<8x8xbf16>
      %145 = arith.index_cast %87 : i32 to index
      %c80 = arith.constant 80 : index
      %146 = vector.load %arg16[%145, %c80] : memref<16x96xbf16, #tpu.memory_space<vmem>>, vector<8x8xbf16>
      %cst_66 = arith.constant dense<0.000000e+00> : vector<8x8xf32>
      %147 = tpu.matmul %142, %144, %cst_66 {dimension_numbers = #tpu.dot_dimension_numbers<[1], [1], [0], [0], [0, 0, 1, 0], [], []>} : vector<8x8xbf16>, vector<8x8xbf16>, vector<8x8xf32> -> vector<8x8xf32>
      %cst_67 = arith.constant 0.353553385 : f32
      %148 = vector.broadcast %cst_67 : f32 to vector<8x8xf32>
      %149 = arith.mulf %147, %148 : vector<8x8xf32>
      %cst_68 = arith.constant dense<0xFF800000> : vector<8xf32>
      %150 = vector.multi_reduction <maximumf>, %149, %cst_68 [1] : vector<8x8xf32> to vector<8xf32>
      %151 = vector.shape_cast %150 : vector<8xf32> to vector<8x1xf32>
      %152 = vector.broadcast %151 : vector<8x1xf32> to vector<8x8xf32>
      %153 = arith.subf %149, %152 : vector<8x8xf32>
      %154 = math.exp %153 : vector<8x8xf32>
      %cst_69 = arith.constant dense<0.000000e+00> : vector<8xf32>
      %155 = vector.multi_reduction <add>, %154, %cst_69 [1] : vector<8x8xf32> to vector<8xf32>
      %156 = vector.shape_cast %155 : vector<8xf32> to vector<8x1xf32>
      %157 = vector.broadcast %156 : vector<8x1xf32> to vector<8x8xf32>
      %158 = arith.divf %154, %157 : vector<8x8xf32>
      %cst_70 = arith.constant 2.500000e-01 : f32
      %159 = vector.broadcast %cst_70 : f32 to vector<8x8xf32>
      %160 = arith.mulf %158, %159 : vector<8x8xf32>
      %161 = arith.addf %135, %160 : vector<8x8xf32>
      %162 = arith.truncf %158 : vector<8x8xf32> to vector<8x8xbf16>
      %cst_71 = arith.constant dense<0.000000e+00> : vector<8x8xf32>
      %163 = tpu.matmul %162, %146, %cst_71 {dimension_numbers = #tpu.dot_dimension_numbers<[1], [0], [0], [1], [0, 0, 1, 1], [], []>} : vector<8x8xbf16>, vector<8x8xbf16>, vector<8x8xf32> -> vector<8x8xf32>
      %164 = arith.truncf %163 : vector<8x8xf32> to vector<8x8xbf16>
      %165 = arith.index_cast %87 : i32 to index
      %c16_72 = arith.constant 16 : index
      %166 = vector.load %arg17[%165, %c16_72] : memref<16x32xbf16, #tpu.memory_space<vmem>>, vector<8x8xbf16>
      tpu.vector_store %arg17[%165, %c16_72], %164 {strides = array<i32>} : memref<16x32xbf16, #tpu.memory_space<vmem>>, vector<8x8xbf16>,
      %167 = arith.index_cast %87 : i32 to index
      %c24 = arith.constant 24 : index
      %168 = vector.load %arg16[%167, %c24] : memref<16x96xbf16, #tpu.memory_space<vmem>>, vector<8x8xbf16>
      %169 = arith.index_cast %87 : i32 to index
      %c56 = arith.constant 56 : index
      %170 = vector.load %arg16[%169, %c56] : memref<16x96xbf16, #tpu.memory_space<vmem>>, vector<8x8xbf16>
      %171 = arith.index_cast %87 : i32 to index
      %c88 = arith.constant 88 : index
      %172 = vector.load %arg16[%171, %c88] : memref<16x96xbf16, #tpu.memory_space<vmem>>, vector<8x8xbf16>
      %cst_73 = arith.constant dense<0.000000e+00> : vector<8x8xf32>
      %173 = tpu.matmul %168, %170, %cst_73 {dimension_numbers = #tpu.dot_dimension_numbers<[1], [1], [0], [0], [0, 0, 1, 0], [], []>} : vector<8x8xbf16>, vector<8x8xbf16>, vector<8x8xf32> -> vector<8x8xf32>
      %cst_74 = arith.constant 0.353553385 : f32
      %174 = vector.broadcast %cst_74 : f32 to vector<8x8xf32>
      %175 = arith.mulf %173, %174 : vector<8x8xf32>
      %cst_75 = arith.constant dense<0xFF800000> : vector<8xf32>
      %176 = vector.multi_reduction <maximumf>, %175, %cst_75 [1] : vector<8x8xf32> to vector<8xf32>
      %177 = vector.shape_cast %176 : vector<8xf32> to vector<8x1xf32>
      %178 = vector.broadcast %177 : vector<8x1xf32> to vector<8x8xf32>
      %179 = arith.subf %175, %178 : vector<8x8xf32>
      %180 = math.exp %179 : vector<8x8xf32>
      %cst_76 = arith.constant dense<0.000000e+00> : vector<8xf32>
      %181 = vector.multi_reduction <add>, %180, %cst_76 [1] : vector<8x8xf32> to vector<8xf32>
      %182 = vector.shape_cast %181 : vector<8xf32> to vector<8x1xf32>
      %183 = vector.broadcast %182 : vector<8x1xf32> to vector<8x8xf32>
      %184 = arith.divf %180, %183 : vector<8x8xf32>
      %cst_77 = arith.constant 2.500000e-01 : f32
      %185 = vector.broadcast %cst_77 : f32 to vector<8x8xf32>
      %186 = arith.mulf %184, %185 : vector<8x8xf32>
      %187 = arith.addf %161, %186 : vector<8x8xf32>
      %188 = arith.truncf %184 : vector<8x8xf32> to vector<8x8xbf16>
      %cst_78 = arith.constant dense<0.000000e+00> : vector<8x8xf32>
      %189 = tpu.matmul %188, %172, %cst_78 {dimension_numbers = #tpu.dot_dimension_numbers<[1], [0], [0], [1], [0, 0, 1, 1], [], []>} : vector<8x8xbf16>, vector<8x8xbf16>, vector<8x8xf32> -> vector<8x8xf32>
      %190 = arith.truncf %189 : vector<8x8xf32> to vector<8x8xbf16>
      %191 = arith.index_cast %87 : i32 to index
      %c24_79 = arith.constant 24 : index
      %192 = vector.load %arg17[%191, %c24_79] : memref<16x32xbf16, #tpu.memory_space<vmem>>, vector<8x8xbf16>
      tpu.vector_store %arg17[%191, %c24_79], %190 {strides = array<i32>} : memref<16x32xbf16, #tpu.memory_space<vmem>>, vector<8x8xbf16>,
      %193 = arith.index_cast %85 : i32 to index
      %c0_80 = arith.constant 0 : index
      %c0_81 = arith.constant 0 : index
      %194 = vector.load %arg15[%193, %c0_80, %c0_81] : memref<2x8x8xf32, #tpu.memory_space<vmem>>, vector<1x8x8xf32>
      %195 = vector.shape_cast %194 : vector<1x8x8xf32> to vector<8x8xf32>
      %196 = vector.shape_cast %187 : vector<8x8xf32> to vector<1x8x8xf32>
      tpu.vector_store %arg15[%193, %c0_80, %c0_81], %196 {strides = array<i32>} : memref<2x8x8xf32, #tpu.memory_space<vmem>>, vector<1x8x8xf32>,
    }
    %c2_i32_8 = arith.constant 2 : i32
    %c0_9 = arith.constant 0 : index
    %c0_10 = arith.constant 0 : index
    %11 = vector.load %arg17[%c0_9, %c0_10] : memref<16x32xbf16, #tpu.memory_space<vmem>>, vector<16x32xbf16>
    %c0_11 = arith.constant 0 : index
    %c0_12 = arith.constant 0 : index
    %12 = vector.load %arg4[%c0_11, %c0_12] : memref<32x32xbf16, #tpu.memory_space<vmem>>, vector<32x32xbf16>
    %cst_13 = arith.constant dense<0.000000e+00> : vector<16x32xf32>
    %13 = tpu.matmul %11, %12, %cst_13 {dimension_numbers = #tpu.dot_dimension_numbers<[1], [0], [0], [1], [0, 0, 1, 1], [], []>} : vector<16x32xbf16>, vector<32x32xbf16>, vector<16x32xf32> -> vector<16x32xf32>
    %c0_14 = arith.constant 0 : index
    %c0_15 = arith.constant 0 : index
    %14 = vector.load %arg5[%c0_14, %c0_15] : memref<1x32xf32, #tpu.memory_space<vmem>>, vector<1x32xf32>
    %15 = vector.broadcast %14 : vector<1x32xf32> to vector<16x32xf32>
    %16 = arith.addf %13, %15 : vector<16x32xf32>
    %17 = arith.addf %1, %16 : vector<16x32xf32>
    %c0_16 = arith.constant 0 : index
    %c0_17 = arith.constant 0 : index
    %18 = vector.load %arg10[%c0_16, %c0_17] : memref<1x32xf32, #tpu.memory_space<vmem>>, vector<1x32xf32>
    %c0_18 = arith.constant 0 : index
    %c0_19 = arith.constant 0 : index
    %19 = vector.load %arg11[%c0_18, %c0_19] : memref<1x32xf32, #tpu.memory_space<vmem>>, vector<1x32xf32>
    %cst_20 = arith.constant dense<0.000000e+00> : vector<16xf32>
    %20 = vector.multi_reduction <add>, %17, %cst_20 [1] : vector<16x32xf32> to vector<16xf32>
    %21 = vector.shape_cast %20 : vector<16xf32> to vector<16x1xf32>
    %cst_21 = arith.constant 3.200000e+01 : f32
    %22 = vector.broadcast %cst_21 : f32 to vector<16x1xf32>
    %23 = arith.divf %21, %22 : vector<16x1xf32>
    %24 = vector.broadcast %23 : vector<16x1xf32> to vector<16x32xf32>
    %25 = arith.subf %17, %24 : vector<16x32xf32>
    %26 = arith.mulf %25, %25 : vector<16x32xf32>
    %cst_22 = arith.constant dense<0.000000e+00> : vector<16xf32>
    %27 = vector.multi_reduction <add>, %26, %cst_22 [1] : vector<16x32xf32> to vector<16xf32>
    %28 = vector.shape_cast %27 : vector<16xf32> to vector<16x1xf32>
    %cst_23 = arith.constant 3.200000e+01 : f32
    %29 = vector.broadcast %cst_23 : f32 to vector<16x1xf32>
    %30 = arith.divf %28, %29 : vector<16x1xf32>
    %31 = vector.broadcast %23 : vector<16x1xf32> to vector<16x32xf32>
    %32 = arith.subf %17, %31 : vector<16x32xf32>
    %cst_24 = arith.constant 9.99999974E-6 : f32
    %33 = vector.broadcast %cst_24 : f32 to vector<16x1xf32>
    %34 = arith.addf %30, %33 : vector<16x1xf32>
    %35 = math.rsqrt %34 : vector<16x1xf32>
    %36 = vector.broadcast %35 : vector<16x1xf32> to vector<16x32xf32>
    %37 = arith.mulf %32, %36 : vector<16x32xf32>
    %38 = vector.broadcast %18 : vector<1x32xf32> to vector<16x32xf32>
    %39 = arith.mulf %37, %38 : vector<16x32xf32>
    %40 = vector.broadcast %19 : vector<1x32xf32> to vector<16x32xf32>
    %41 = arith.addf %39, %40 : vector<16x32xf32>
    %42 = arith.truncf %41 : vector<16x32xf32> to vector<16x32xbf16>
    %c0_25 = arith.constant 0 : index
    %c0_26 = arith.constant 0 : index
    %43 = vector.load %arg6[%c0_25, %c0_26] : memref<32x64xbf16, #tpu.memory_space<vmem>>, vector<32x64xbf16>
    %cst_27 = arith.constant dense<0.000000e+00> : vector<16x64xf32>
    %44 = tpu.matmul %42, %43, %cst_27 {dimension_numbers = #tpu.dot_dimension_numbers<[1], [0], [0], [1], [0, 0, 1, 1], [], []>} : vector<16x32xbf16>, vector<32x64xbf16>, vector<16x64xf32> -> vector<16x64xf32>
    %c0_28 = arith.constant 0 : index
    %c0_29 = arith.constant 0 : index
    %45 = vector.load %arg7[%c0_28, %c0_29] : memref<1x64xf32, #tpu.memory_space<vmem>>, vector<1x64xf32>
    %46 = vector.broadcast %45 : vector<1x64xf32> to vector<16x64xf32>
    %47 = arith.addf %44, %46 : vector<16x64xf32>
    %cst_30 = arith.constant 0.000000e+00 : f32
    %48 = vector.broadcast %cst_30 : f32 to vector<16x64xf32>
    %49 = arith.maximumf %47, %48 : vector<16x64xf32>
    %50 = arith.truncf %49 : vector<16x64xf32> to vector<16x64xbf16>
    %c0_31 = arith.constant 0 : index
    %c0_32 = arith.constant 0 : index
    %51 = vector.load %arg8[%c0_31, %c0_32] : memref<64x32xbf16, #tpu.memory_space<vmem>>, vector<64x32xbf16>
    %cst_33 = arith.constant dense<0.000000e+00> : vector<16x32xf32>
    %52 = tpu.matmul %50, %51, %cst_33 {dimension_numbers = #tpu.dot_dimension_numbers<[1], [0], [0], [1], [0, 0, 1, 1], [], []>} : vector<16x64xbf16>, vector<64x32xbf16>, vector<16x32xf32> -> vector<16x32xf32>
    %c0_34 = arith.constant 0 : index
    %c0_35 = arith.constant 0 : index
    %53 = vector.load %arg9[%c0_34, %c0_35] : memref<1x32xf32, #tpu.memory_space<vmem>>, vector<1x32xf32>
    %54 = vector.broadcast %53 : vector<1x32xf32> to vector<16x32xf32>
    %55 = arith.addf %52, %54 : vector<16x32xf32>
    %56 = arith.addf %41, %55 : vector<16x32xf32>
    %c0_36 = arith.constant 0 : index
    %c0_37 = arith.constant 0 : index
    %57 = vector.load %arg12[%c0_36, %c0_37] : memref<1x32xf32, #tpu.memory_space<vmem>>, vector<1x32xf32>
    %c0_38 = arith.constant 0 : index
    %c0_39 = arith.constant 0 : index
    %58 = vector.load %arg13[%c0_38, %c0_39] : memref<1x32xf32, #tpu.memory_space<vmem>>, vector<1x32xf32>
    %cst_40 = arith.constant dense<0.000000e+00> : vector<16xf32>
    %59 = vector.multi_reduction <add>, %56, %cst_40 [1] : vector<16x32xf32> to vector<16xf32>
    %60 = vector.shape_cast %59 : vector<16xf32> to vector<16x1xf32>
    %cst_41 = arith.constant 3.200000e+01 : f32
    %61 = vector.broadcast %cst_41 : f32 to vector<16x1xf32>
    %62 = arith.divf %60, %61 : vector<16x1xf32>
    %63 = vector.broadcast %62 : vector<16x1xf32> to vector<16x32xf32>
    %64 = arith.subf %56, %63 : vector<16x32xf32>
    %65 = arith.mulf %64, %64 : vector<16x32xf32>
    %cst_42 = arith.constant dense<0.000000e+00> : vector<16xf32>
    %66 = vector.multi_reduction <add>, %65, %cst_42 [1] : vector<16x32xf32> to vector<16xf32>
    %67 = vector.shape_cast %66 : vector<16xf32> to vector<16x1xf32>
    %cst_43 = arith.constant 3.200000e+01 : f32
    %68 = vector.broadcast %cst_43 : f32 to vector<16x1xf32>
    %69 = arith.divf %67, %68 : vector<16x1xf32>
    %70 = vector.broadcast %62 : vector<16x1xf32> to vector<16x32xf32>
    %71 = arith.subf %56, %70 : vector<16x32xf32>
    %cst_44 = arith.constant 9.99999974E-6 : f32
    %72 = vector.broadcast %cst_44 : f32 to vector<16x1xf32>
    %73 = arith.addf %69, %72 : vector<16x1xf32>
    %74 = math.rsqrt %73 : vector<16x1xf32>
    %75 = vector.broadcast %74 : vector<16x1xf32> to vector<16x32xf32>
    %76 = arith.mulf %71, %75 : vector<16x32xf32>
    %77 = vector.broadcast %57 : vector<1x32xf32> to vector<16x32xf32>
    %78 = arith.mulf %76, %77 : vector<16x32xf32>
    %79 = vector.broadcast %58 : vector<1x32xf32> to vector<16x32xf32>
    %80 = arith.addf %78, %79 : vector<16x32xf32>
    %81 = vector.shape_cast %80 : vector<16x32xf32> to vector<2x8x32xf32>
    %82 = arith.truncf %81 : vector<2x8x32xf32> to vector<2x8x32xbf16>
    %c0_45 = arith.constant 0 : index
    %c0_46 = arith.constant 0 : index
    %c0_47 = arith.constant 0 : index
    %83 = vector.load %arg14[%c0_45, %c0_46, %c0_47] : memref<2x8x32xbf16, #tpu.memory_space<vmem>>, vector<2x8x32xbf16>
    tpu.vector_store %arg14[%c0_45, %c0_46, %c0_47], %82 {strides = array<i32>} : memref<2x8x32xbf16, #tpu.memory_space<vmem>>, vector<2x8x32xbf16>,
    return
  }
  func.func @transform_0(%arg0: i32) -> (i32, i32, i32) {
    %c0_i32 = arith.constant 0 : i32
    %c0_i32_0 = arith.constant 0 : i32
    %c0_i32_1 = arith.constant 0 : i32
    return %arg0, %c0_i32, %c0_i32_0 : i32, i32, i32
  }
  func.func @transform_1(%arg0: i32) -> (i32, i32) {
    %c0_i32 = arith.constant 0 : i32
    %c0_i32_0 = arith.constant 0 : i32
    %c0_i32_1 = arith.constant 0 : i32
    return %c0_i32, %c0_i32_0 : i32, i32
  }
  func.func @transform_2(%arg0: i32) -> (i32, i32) {
    %c0_i32 = arith.constant 0 : i32
    %c0_i32_0 = arith.constant 0 : i32
    %c0_i32_1 = arith.constant 0 : i32
    return %c0_i32, %c0_i32_0 : i32, i32
  }
  func.func @transform_3(%arg0: i32) -> (i32, i32) {
    %c0_i32 = arith.constant 0 : i32
    %c0_i32_0 = arith.constant 0 : i32
    %c0_i32_1 = arith.constant 0 : i32
    return %c0_i32, %c0_i32_0 : i32, i32
  }
  func.func @transform_4(%arg0: i32) -> (i32, i32) {
    %c0_i32 = arith.constant 0 : i32
    %c0_i32_0 = arith.constant 0 : i32
    %c0_i32_1 = arith.constant 0 : i32
    return %c0_i32, %c0_i32_0 : i32, i32
  }
  func.func @transform_5(%arg0: i32) -> (i32, i32) {
    %c0_i32 = arith.constant 0 : i32
    %c0_i32_0 = arith.constant 0 : i32
    %c0_i32_1 = arith.constant 0 : i32
    return %c0_i32, %c0_i32_0 : i32, i32
  }
  func.func @transform_6(%arg0: i32) -> (i32, i32) {
    %c0_i32 = arith.constant 0 : i32
    %c0_i32_0 = arith.constant 0 : i32
    %c0_i32_1 = arith.constant 0 : i32
    return %c0_i32, %c0_i32_0 : i32, i32
  }
  func.func @transform_7(%arg0: i32) -> (i32, i32) {
    %c0_i32 = arith.constant 0 : i32
    %c0_i32_0 = arith.constant 0 : i32
    %c0_i32_1 = arith.constant 0 : i32
    return %c0_i32, %c0_i32_0 : i32, i32
  }
  func.func @transform_8(%arg0: i32) -> (i32, i32) {
    %c0_i32 = arith.constant 0 : i32
    %c0_i32_0 = arith.constant 0 : i32
    %c0_i32_1 = arith.constant 0 : i32
    return %c0_i32, %c0_i32_0 : i32, i32
  }
  func.func @transform_9(%arg0: i32) -> (i32, i32) {
    %c0_i32 = arith.constant 0 : i32
    %c0_i32_0 = arith.constant 0 : i32
    %c0_i32_1 = arith.constant 0 : i32
    return %c0_i32, %c0_i32_0 : i32, i32
  }
  func.func @transform_10(%arg0: i32) -> (i32, i32) {
    %c0_i32 = arith.constant 0 : i32
    %c0_i32_0 = arith.constant 0 : i32
    %c0_i32_1 = arith.constant 0 : i32
    return %c0_i32, %c0_i32_0 : i32, i32
  }
  func.func @transform_11(%arg0: i32) -> (i32, i32) {
    %c0_i32 = arith.constant 0 : i32
    %c0_i32_0 = arith.constant 0 : i32
    %c0_i32_1 = arith.constant 0 : i32
    return %c0_i32, %c0_i32_0 : i32, i32
  }
  func.func @transform_12(%arg0: i32) -> (i32, i32) {
    %c0_i32 = arith.constant 0 : i32
    %c0_i32_0 = arith.constant 0 : i32
    %c0_i32_1 = arith.constant 0 : i32
    return %c0_i32, %c0_i32_0 : i32, i32
  }
  func.func @transform_13(%arg0: i32) -> (i32, i32, i32) {
    %c0_i32 = arith.constant 0 : i32
    %c0_i32_0 = arith.constant 0 : i32
    %c0_i32_1 = arith.constant 0 : i32
    return %arg0, %c0_i32, %c0_i32_0 : i32, i32, i32
  }
  func.func @transform_14(%arg0: i32) -> (i32, i32, i32) {
    %c0_i32 = arith.constant 0 : i32
    %c0_i32_0 = arith.constant 0 : i32
    %c0_i32_1 = arith.constant 0 : i32
    return %arg0, %c0_i32, %c0_i32_0 : i32, i32, i32
  }
}

</mosaic_0001>

<bundles_post_ra>
// kernel: tpu_custom_call.1
= control target key start
LH: loop header
LB: loop body
LE: loop exit
PB: predicated region body
PF: predicated region fallthrough
CT: control target
= control target key end

     0   :  { %20 = vsyncpa [#allocation5], 0  ;;  %s1644_s0 = inlined_call_operand.vmem [shape: f32[2,8,32], index: 0, kind: input, shape index: {}]   ;;  %s1645_s1 = inlined_call_operand.vmem [shape: bf16[32,96], index: 1, kind: input, shape index: {}]   ;;  %s1646_s2 = inlined_call_operand.vmem [shape: f32[1,96], index: 2, kind: input, shape index: {}]   ;;  %s1647_s3 = inlined_call_operand.vmem [shape: bf16[32,32], index: 3, kind: input, shape index: {}]   ;;  %s1648_s4 = inlined_call_operand.vmem [shape: f32[1,32], index: 4, kind: input, shape index: {}]   ;;  %s1649_s5 = inlined_call_operand.hbm [shape: bf16[32,64], index: 5, kind: input, shape index: {}]   ;;  %s1650_s6 = inlined_call_operand.vmem [shape: f32[1,64], index: 6, kind: input, shape index: {}]   ;;  %s1651_s7 = inlined_call_operand.vmem [shape: bf16[64,32], index: 7, kind: input, shape index: {}]   ;;  %s1652_s8 = inlined_call_operand.vmem [shape: f32[1,32], index: 8, kind: input, shape index: {}]   ;;  %s1653_s9 = inlined_call_operand.vmem [shape: f32[1,32], index: 9, kind: input, shape index: {}]   ;;  %s1654_s10 = inlined_call_operand.vmem [shape: f32[1,32], index: 10, kind: input, shape index: {}]   ;;  %s1655_s11 = inlined_call_operand.vmem [shape: f32[1,32], index: 11, kind: input, shape index: {}]   ;;  %s1656_s12 = inlined_call_operand.vmem [shape: f32[1,32], index: 12, kind: input, shape index: {}]   ;;  %s1657_s13 = inlined_call_operand.hbm [shape: bf16[2,8,32], index: 13, kind: output, shape index: {0}]   ;;  %s1658_s14 = inlined_call_operand.hbm [shape: f32[2,8,8], index: 14, kind: output, shape index: {1}]  }
   0x1   :  { %21 = vsyncpa [#allocation6], 0 }
   0x2   :  { %22 = vsyncpa [#allocation9], 0  ;;  %s1337_s29 = smov [#allocation4]  }
   0x3   :  { %s38_s30 = sshll.u32 %s1337_s29, 4  ;;  %s39_s30 = int_to_ptr.vmem [resolvable:$true] %s38_s30 }
   0x4   :  { %s1271_s15 = scalar_lea.vmem %s39_s30, 256  ;;  %p1276_p1 = scmp.lt.s32.totalorder %s39_s30, %s39_s30 }
   0x5   :  { %p1272_p0 = scmp.ne.s32.totalorder %s39_s30, %s1271_s15  ;;  %p1277_p2 = scmp.lt.s32.totalorder %s1271_s15, %s1271_s15 }
   0x7   :  { %p1278_p3 = por %p1277_p2, %p1276_p1 }
   0x9   :  { %p1279_p4 = pnand %p1278_p3, %p1272_p0 }
   0xb   :  { %1282 = shalt.err (!%p1279_p4)
}
   0xc   :  { %s1338_s16 = smov 64   ;;  %s1339_s17 = smov 4  }
   0xd   :  { %44 = dma.hbm_to_vmem [thread:$0]  %s1649_s5, 256, %s39_s30, [#allocation5], %s1338_s16, %s1338_s16, %s1339_s17  }
   0xe   :  { %1327 = dma.done.wait [#allocation5], 256  }
   0xf   :  { %1328 = vsyncadd [#allocation5], 4294967040  ;;  %v1340_v0 = vmov 0.0   ;;  %vm1341_vm0 = vmmov 0   ;;  %v1224_v1 = vld [vmem:[%s1645_s1 + $0x8] sm:$0xff]   ;;  %v1225_v2 = vld [vmem:[%s1645_s1] sm:$0xff]  }
  0x10   :  { %1107 = vmatprep.subr.bf16.mxu0 %v1340_v0  ;;  %1111 = vmatprep.mubr.msk.bf16.mxu0 %vm1341_vm0, %v1340_v0  ;;  %v1455_v3 = vld [vmem:[%s1644_s0] sm:$0xff]  ;;  %v1460_v4 = vld [vmem:[%s1644_s0 + $0x8] sm:$0xff]  ;;  %vm89_vm1 = vcmask 261120   ;;  %vm142_vm2 = vcmask 781312   ;;  %s1469_s0 = smov 0  }
  0x11   :  { %1108 = vmatpush3.bf16.msra.mxu0 %v1224_v1  ;;  %v65_v5 = vpack.c.bf16 %v1460_v4, %v1455_v3  ;;  %v1029_v6 = vld [vmem:[%s1646_s2] ss:$0 sm:$0xff] }
  0x12   :  { %1109 = vmatprep.subr.bf16.mxu0 %v1340_v0 }
  0x15   :  { %1110 = vmatpush3.bf16.msra.mxu0 %v1225_v2 }
  0x18   :  { %1112 = vmatmul.mubr.msk.bf16.vlgmr.msra.gmra.mxu0 %vm89_vm1, %v65_v5 }
  0xd8   :  { %v127_v7 = vpop.f32.mrf.mxu0 }
  0xd9   :  { %v128_v8 = vadd.f32 %v1029_v6, %v127_v7 }
  0xda   :  { %v1113_v9 = vpop.f32.mrf.mxu0 }
  0xdb   :  { %v1072_v10 = vpack.c.bf16 %v128_v8, %v128_v8 }
  0xdc   :  { %v130_v11 = vpop.f32.mrf.mxu0 }
  0xdd   :  { %143 = vst.msk [vmem:[#allocation2] sm:$0xf] %vm142_vm2, %v1072_v10  ;;  %v131_v12 = vadd.f32 %v1029_v6, %v130_v11 }
  0xde   :  { %v1114_v13 = vpop.f32.mrf.mxu0 }
  0xdf   :  { %v1073_v14 = vpack.c.bf16 %v131_v12, %v131_v12 }
  0xe1   :  { %144 = vst.msk [vmem:[#allocation2 + $0x4] sm:$0xf] %vm142_vm2, %v1073_v14 }
  0xe2 LB: > { %v1342_v15 = vmov 0.0   ;;  %vm1343_vm3 = vmmov 0   ;;  %s1035_s2 = sshll.u32 %s1335_s0, 3  ;;  %s1344_s15 = smov 96   ;;  %vm162_vm4 = vcmask 64512   ;;  %vm229_vm5 = vcmask 1043456   ;;  %s1335_s0 = sphi %s1469_s0, %s150_s0  }
  0xe3   : > { %1115 = vmatprep.subr.bf16.mxu0 %v1342_v15  ;;  %1117 = vmatprep.mubr.msk.bf16.mxu0 %vm1343_vm3, %v1342_v15  ;;  %s1483_s28 = sshra.s32 %s1035_s2, 3  ;;  %s1345_s18 = smov 64   ;;  %vm276_vm6 = vcmask 60416   ;;  %vm402_vm7 = vcmask 126016   ;;  %vm528_vm8 = vcmask 191616   ;;  %vm654_vm9 = vcmask 257216  }
  0xe4   : > { %1121 = vmatprep.subr.bf16.mxu1 %v1342_v15  ;;  %1123 = vmatprep.mubr.msk.bf16.mxu1 %vm1343_vm3, %v1342_v15  ;;  %s1036_s29 = sshll.u32 %s1483_s28, 2  ;;  %s1346_s19 = smov 88  }
  0xe5   : > { %s1488_s30 = scalar_lea.vmem [#allocation2], %s1036_s29  ;;  %s1347_s20 = smov 72  }
  0xe6   : > { %s1348_s21 = smov 120   ;;  %s1349_s22 = smov 80  }
  0xe7   : > { %s1350_s23 = smov 112   ;;  %s1351_s24 = smov 104  }
  0xe8   : > { %v156_v16 = vld [vmem:[%s1488_s30] sm:$0xf]  ;;  %s1536_s5 = scalar_lea.vmem [#allocation3], %s1036_s29  ;;  %s1352_s25 = smov 56  }
  0xe9   : > { %v1037_v17 = vcombine.low %v156_v16, %v156_v16  ;;  %v1497_v20 = vld [vmem:[%s1488_s30] ss:$0 sps:$4 sm:$0xff]   ;;  %s1353_s26 = smov 48   ;;  %s1354_s1 = smov 40  }
  0xea   : > { %v1502_v27 = vld [vmem:[%s1488_s30] ss:$0 sps:$4 sm:$0xff]   ;;  %s656_s27 = scalar_lea.vmem [#allocation8], %s1035_s2  ;;  %s1355_s28 = smov 8  }
  0xeb   : > { %160 = vrot.lane.b32.xlu0 %v1037_v17, %s1344_s15  ;;  %224 = vrot.lane.b32.xlu1 %v1037_v17, %s1345_s18  ;;  %v1510_v35 = vld [vmem:[%s1488_s30] ss:$0 sps:$4 sm:$0xff]   ;;  %s1356_s29 = smov 16   ;;  %s1357_s2 = smov 24  }
  0xec   : > { %s150_s0 = sadd.s32 1, %s1335_s0  }
  0xed   : > { %p147_p5 = scmp.ge.s32.totalorder %s150_s0, 2  }
  0xee   :  { %vm889_vm10 = vcmask (%p147_p5), 523264  }
  0xef   : > { %284 = vrot.lane.b32.xlu1 %v1497_v20, %s1346_s19 }
 0x15d   : > { %v161_v18 = vpop.permute.xlu0 %160  ;;  %v225_v28 = vpop.permute.xlu1 %224 }
 0x15e   : > { %v167_v19 = vsel %vm162_vm4, %v161_v18, 0  ;;  %v231_v29 = vsel %vm229_vm5, %v225_v28, 0 }
 0x15f   : > { %1116 = vmatpush3.bf16.xpose.msra.mxu0 %v167_v19  ;;  %1122 = vmatpush3.bf16.msra.mxu1 %v231_v29 }
 0x160   : > { %1133 = vmatprep.subr.bf16.mxu0 %v1342_v15  ;;  %1127 = vmatprep.subr.bf16.mxu1 %v1342_v15 }
 0x161   : > { %v285_v36 = vpop.permute.xlu1 %284 }
 0x162   : > { %v290_v42 = vsel %vm162_vm4, %v285_v36, 0 }
 0x166   : > { %1118 = vmatmul.mubr.msk.bf16.vlgmr.msra.gmra.mxu0 %vm162_vm4, %v156_v16 }
 0x167   : > { %1135 = vmatprep.mubr.msk.bf16.mxu0 %vm1343_vm3, %v1342_v15 }
 0x226   : > { %v203_v21 = vpop.f32.mrf.mxu0 }
 0x227   : > { %v209_v22 = vmul.f32 0.35355338, %v203_v21 }
 0x228   : > { %v1119_v23 = vpop.f32.mrf.mxu0 }
 0x229   : > { %v210_v24 = vsel %vm162_vm4, %v209_v22, -inf }
 0x22a   : > { %211 = vmax.xlane.f32.xlu0 %v210_v24  ;;  %v206_v25 = vpop.f32.mrf.mxu0 }
 0x22c   : > { %v1120_v26 = vpop.f32.mrf.mxu0 }
 0x240   : > { %536 = vrot.lane.b32.xlu0 %v1502_v27, %s1347_s20 }
 0x2b3   : > { %v212_v30 = vpop.xlane.xlu0 %211 }
 0x2b4   : > { %v213_v31 = vsub.f32 %v209_v22, %v212_v30 }
 0x2b6   : > { %v214_v32 = vmul.f32 1.442695, %v213_v31 }
 0x2b7   : > { %v537_v45 = vpop.permute.xlu0 %536 }
 0x2b8   : > { %1230 = vpow2.f32 %v214_v32  ;;  %v542_v47 = vsel %vm162_vm4, %v537_v45, 0 }
 0x2c5   : > { %v1231_v33 = vpop.eup %1230 }
 0x2c6   : > { %v216_v34 = vsel %vm162_vm4, %v1231_v33, 0.0 }
 0x2c7   : > { %217 = vadd.xlane.f32.xlu1 %v216_v34 }
 0x2d8   : > { %282 = vrot.lane.b32.xlu1 %v1497_v20, %s1348_s21 }
 0x2dc   : > { %410 = vrot.lane.b32.xlu1 %v1510_v35, %s1349_s22 }
 0x2e0   : > { %408 = vrot.lane.b32.xlu1 %v1510_v35, %s1350_s23 }
 0x2e4   : > { %534 = vrot.lane.b32.xlu1 %v1502_v27, %s1351_s24 }
 0x350   : > { %v218_v37 = vpop.xlane.xlu1 %217 }
 0x351   : > { %1232 = vrcp.f32 %v218_v37 }
 0x354   : > { %v283_v40 = vpop.permute.xlu1 %282 }
 0x358   : > { %v411_v43 = vpop.permute.xlu1 %410 }
 0x359   : > { %v416_v44 = vsel %vm162_vm4, %v411_v43, 0 }
 0x35c   : > { %v409_v46 = vpop.permute.xlu1 %408 }
 0x35e   : > { %v1233_v38 = vpop.eup %1232 }
 0x35f   : > { %v1515_v39 = vmul.f32 %v1233_v38, %v1231_v33 }
 0x360   : > { %v535_v48 = vpop.permute.xlu1 %534 }
 0x361   : > { %v223_v41 = vpack.c.bf16 %v1515_v39, %v1515_v39 }
 0x363   : > { %1124 = vmatmul.mubr.msk.bf16.vlgmr.msra.gmra.mxu1 %vm162_vm4, %v223_v41 }
 0x364   : > { %1128 = vmatpush3.bf16.xpose.msra.mxu1 %v290_v42  ;;  %1129 = vmatprep.mubr.msk.bf16.mxu1 %vm1343_vm3, %v1342_v15  ;;  %v221_v42 = vmul.f32 0.25, %v1515_v39 }
 0x365   : > { %1139 = vmatprep.subr.bf16.mxu1 %v1342_v15 }
 0x36b   : > { %1130 = vmatmul.mubr.msk.bf16.vlgmr.msra.gmra.mxu1 %vm162_vm4, %v283_v40 }
 0x36c   : > { %1140 = vmatpush3.bf16.xpose.msra.mxu1 %v416_v44  ;;  %1141 = vmatprep.mubr.msk.bf16.mxu1 %vm1343_vm3, %v1342_v15 }
 0x36d   : > { %1151 = vmatprep.subr.bf16.mxu1 %v1342_v15 }
 0x373   : > { %1142 = vmatmul.mubr.msk.bf16.vlgmr.msra.gmra.mxu1 %vm162_vm4, %v409_v46 }
 0x374   : > { %1152 = vmatpush3.bf16.xpose.msra.mxu1 %v542_v47  ;;  %1153 = vmatprep.mubr.msk.bf16.mxu1 %vm1343_vm3, %v1342_v15 }
 0x375   :  { %1163 = vmatprep.subr.bf16.mxu1 (%p147_p5), %v1340_v0 }
 0x37b   : > { %1154 = vmatmul.mubr.msk.bf16.vlgmr.msra.gmra.mxu1 %vm162_vm4, %v535_v48 }
 0x37c   :  { %1167 = vmatprep.mubr.msk.bf16.mxu1 (%p147_p5), %vm1341_vm0, %v1340_v0 }
 0x423   : > { %v267_v49 = vpop.f32.mrf.mxu1 }
 0x424   : > { %v273_v50 = vpack.c.bf16 %v267_v49, %v267_v49 }
 0x425   : > { %v1125_v51 = vpop.f32.mrf.mxu1 }
 0x426   : > { %277 = vst.msk [vmem:[%s1536_s5] sm:$0xf] %vm276_vm6, %v273_v50 }
 0x427   : > { %v270_v52 = vpop.f32.mrf.mxu1 }
 0x429   : > { %v1126_v53 = vpop.f32.mrf.mxu1 }
 0x42b   : > { %v326_v54 = vpop.f32.mrf.mxu1 }
 0x42c   : > { %v332_v55 = vmul.f32 0.35355338, %v326_v54 }
 0x42d   : > { %v1131_v56 = vpop.f32.mrf.mxu1 }
 0x42e   : > { %v333_v57 = vsel %vm162_vm4, %v332_v55, -inf }
 0x42f   : > { %334 = vmax.xlane.f32.xlu1 %v333_v57  ;;  %v329_v58 = vpop.f32.mrf.mxu1 }
 0x431   : > { %v1132_v59 = vpop.f32.mrf.mxu1 }
 0x433   : > { %v452_v60 = vpop.f32.mrf.mxu1 }
 0x434   : > { %v458_v61 = vmul.f32 0.35355338, %v452_v60 }
 0x435   : > { %v1143_v62 = vpop.f32.mrf.mxu1 }
 0x436   : > { %v459_v63 = vsel %vm162_vm4, %v458_v61, -inf }
 0x437   : > { %460 = vmax.xlane.f32.xlu0 %v459_v63  ;;  %v455_v1 = vpop.f32.mrf.mxu1 }
 0x439   : > { %v1144_v2 = vpop.f32.mrf.mxu1 }
 0x43b   : > { %v578_v5 = vpop.f32.mrf.mxu1 }
 0x43c   : > { %v584_v6 = vmul.f32 0.35355338, %v578_v5 }
 0x43d   : > { %v1155_v7 = vpop.f32.mrf.mxu1 }
 0x43e   : > { %v585_v8 = vsel %vm162_vm4, %v584_v6, -inf }
 0x43f   : > { %586 = vmax.xlane.f32.xlu1 %v585_v8  ;;  %v581_v9 = vpop.f32.mrf.mxu1  ;;  %v1246_v8 = vld [vmem:[%s1647_s3 + $0x8] sm:$0xff] (%p147_p5)  }
 0x440   :  { %1164 = vmatpush3.bf16.msra.mxu1 (%p147_p5), %v1246_v8  ;;  %v1247_v9 = vld [vmem:[%s1647_s3] sm:$0xff] (%p147_p5)  }
 0x441   : > { %v1156_v10 = vpop.f32.mrf.mxu1  ;;  %1165 = vmatprep.subr.bf16.mxu1 (%p147_p5), %v1340_v0 }
 0x444   :  { %1166 = vmatpush3.bf16.msra.mxu1 (%p147_p5), %v1247_v9 }
 0x445   :  { %1171 = vmatprep.subr.bf16.mxu1 (%p147_p5), %v1340_v0 }
 0x4b8   : > { %v335_v11 = vpop.xlane.xlu1 %334 }
 0x4b9   : > { %v336_v12 = vsub.f32 %v332_v55, %v335_v11  ;;  %v1053_v11 = vld [vmem:[%s1648_s4] ss:$0 sm:$0xff] (%p147_p5) }
 0x4bb   : > { %v337_v13 = vmul.f32 1.442695, %v336_v12 }
 0x4bd   : > { %1234 = vpow2.f32 %v337_v13 }
 0x4c0   : > { %v461_v23 = vpop.xlane.xlu0 %460 }
 0x4c1   : > { %v462_v24 = vsub.f32 %v458_v61, %v461_v23 }
 0x4c3   : > { %v463_v25 = vmul.f32 1.442695, %v462_v24 }
 0x4c8   : > { %v587_v14 = vpop.xlane.xlu1 %586 }
 0x4c9   : > { %v588_v16 = vsub.f32 %v584_v6, %v587_v14 }
 0x4ca   : > { %v1235_v17 = vpop.eup %1234 }
 0x4cb   : > { %v589_v18 = vmul.f32 1.442695, %v588_v16  ;;  %v339_v19 = vsel %vm162_vm4, %v1235_v17, 0.0 }
 0x4cc   : > { %340 = vadd.xlane.f32.xlu1 %v339_v19 }
 0x4cd   : > { %1236 = vpow2.f32 %v589_v18 }
 0x4ce   : > { %1238 = vpow2.f32 %v463_v25 }
 0x4da   : > { %v1237_v21 = vpop.eup %1236 }
 0x4db   : > { %v591_v22 = vsel %vm162_vm4, %v1237_v21, 0.0  ;;  %v1239_v26 = vpop.eup %1238 }
 0x4dc   : > { %592 = vadd.xlane.f32.xlu0 %v591_v22  ;;  %v465_v28 = vsel %vm162_vm4, %v1239_v26, 0.0 }
 0x4dd   : > { %347 = vrot.lane.b32.xlu1 %v1497_v20, %s1352_s25 }
 0x4f2   : > { %473 = vrot.lane.b32.xlu0 %v1510_v35, %s1353_s26 }
 0x501   : > { %466 = vadd.xlane.f32.xlu1 %v465_v28 }
 0x512   : > { %599 = vrot.lane.b32.xlu1 %v1502_v27, %s1354_s1 }
 0x555   : > { %v341_v29 = vpop.xlane.xlu1 %340 }
 0x556   : > { %1240 = vrcp.f32 %v341_v29 }
 0x559   : > { %v348_v30 = vpop.permute.xlu1 %347 }
 0x55a   : > { %v353_v31 = vsel %vm229_vm5, %v348_v30, 0 }
 0x55b   : > { %1134 = vmatpush3.bf16.msra.mxu0 %v353_v31 }
 0x55c   : > { %1145 = vmatprep.subr.bf16.mxu0 %v1342_v15 }
 0x563   : > { %v1241_v20 = vpop.eup %1240 }
 0x564   : > { %v343_v32 = vmul.f32 %v1241_v20, %v1235_v17 }
 0x565   : > { %v593_v33 = vpop.xlane.xlu0 %592 }
 0x566   : > { %v346_v34 = vpack.c.bf16 %v343_v32, %v343_v32  ;;  %1242 = vrcp.f32 %v593_v33  ;;  %v344_v38 = vmul.f32 0.25, %v343_v32  ;;  %v1249_v33 = vld [vmem:[#allocation4 + $0x8] sm:$0xff] (%p147_p5)  }
 0x568   : > { %1136 = vmatmul.mubr.msk.bf16.vlgmr.msra.gmra.mxu0 %vm162_vm4, %v346_v34  ;;  %v345_v45 = vadd.f32 %v344_v38, %v221_v42  ;;  %v1251_v34 = vld [vmem:[%s1651_s7 + $0x18] sm:$0xff] (%p147_p5)  }
 0x569   : > { %v474_v35 = vpop.permute.xlu0 %473  ;;  %1147 = vmatprep.mubr.msk.bf16.mxu0 %vm1343_vm3, %v1342_v15 }
 0x56a   : > { %v479_v27 = vsel %vm229_vm5, %v474_v35, 0 }
 0x56b   : > { %1146 = vmatpush3.bf16.msra.mxu0 %v479_v27 }
 0x56c   : > { %1157 = vmatprep.subr.bf16.mxu0 %v1342_v15 }
 0x573   : > { %v1243_v37 = vpop.eup %1242 }
 0x574   : > { %v595_v44 = vmul.f32 %v1243_v37, %v1237_v21 }
 0x576   : > { %v596_v50 = vmul.f32 0.25, %v595_v44  ;;  %v598_v39 = vpack.c.bf16 %v595_v44, %v595_v44 }
 0x58a   : > { %v467_v36 = vpop.xlane.xlu1 %466 }
 0x58b   : > { %1244 = vrcp.f32 %v467_v36 }
 0x58e   : > { %v600_v41 = vpop.permute.xlu1 %599 }
 0x58f   : > { %v605_v46 = vsel %vm229_vm5, %v600_v41, 0 }
 0x598   : > { %v1245_v40 = vpop.eup %1244 }
 0x599   : > { %v469_v43 = vmul.f32 %v1245_v40, %v1239_v26 }
 0x59b   : > { %v470_v47 = vmul.f32 0.25, %v469_v43  ;;  %v472_v48 = vpack.c.bf16 %v469_v43, %v469_v43  ;;  %v1058_v43 = vld [vmem:[%s1653_s9] ss:$0 sm:$0xff] (%p147_p5) }
 0x59d   : > { %v471_v49 = vadd.f32 %v470_v47, %v345_v45  ;;  %1148 = vmatmul.mubr.msk.bf16.vlgmr.msra.gmra.mxu0 %vm162_vm4, %v472_v48  ;;  %v1059_v47 = vld [vmem:[%s1654_s10] ss:$0 sm:$0xff] (%p147_p5) }
 0x59e   : > { %1158 = vmatpush3.bf16.msra.mxu0 %v605_v46  ;;  %1159 = vmatprep.mubr.msk.bf16.mxu0 %vm1343_vm3, %v1342_v15 }
 0x59f   : > { %v597_v51 = vadd.f32 %v596_v50, %v471_v49  ;;  %1179 = vmatprep.subr.bf16.mxu0 (%p147_p5), %v1340_v0 }
 0x5a1   : > { %657 = vst.msk [vmem:[%s656_s27] sm:$0xff] %vm162_vm4, %v597_v51 }
 0x5a5   : > { %1160 = vmatmul.mubr.msk.bf16.vlgmr.msra.gmra.mxu0 %vm162_vm4, %v598_v39  ;;  %v1252_v39 = vld [vmem:[%s1651_s7 + $0x10] sm:$0xff] (%p147_p5)  }
 0x5a6   :  { %1187 = vmatprep.mubr.msk.bf16.mxu0 (%p147_p5), %vm1341_vm0, %v1340_v0  ;;  %1180 = vmatpush3.bf16.msra.mxu0 (%p147_p5), %v1251_v34 }
 0x5a7   :  { %1181 = vmatprep.subr.bf16.mxu0 (%p147_p5), %v1340_v0 }
 0x5aa   :  { %1182 = vmatpush3.bf16.msra.mxu0 (%p147_p5), %v1252_v39 }
 0x5ab   :  { %1183 = vmatprep.subr.bf16.mxu0 (%p147_p5), %v1340_v0 }
 0x628   : > { %v389_v52 = vpop.f32.mrf.mxu0 }
 0x629   : > { %v1074_v53 = vpack.c.bf16 %v389_v52, %v389_v52  ;;  %v1253_v52 = vld [vmem:[%s1651_s7 + $0x8] sm:$0xff] (%p147_p5)  }
 0x62a   : > { %v1137_v54 = vpop.f32.mrf.mxu0  ;;  %1184 = vmatpush3.bf16.msra.mxu0 (%p147_p5), %v1253_v52 }
 0x62b   : > { %399 = vrot.lane.b32.xlu1 %v1074_v53, %s1355_s28  ;;  %1185 = vmatprep.subr.bf16.mxu0 (%p147_p5), %v1340_v0  ;;  %v1254_v53 = vld [vmem:[%s1651_s7] sm:$0xff] (%p147_p5)  }
 0x62c   : > { %v392_v55 = vpop.f32.mrf.mxu0  ;;  %v1060_v54 = vld [vmem:[%s1650_s6] ss:$0 sm:$0xff] (%p147_p5)  ;;  %s1358_s6 = smov (%p147_p5), [#allocation8]  }
 0x62d   :  { %s1002_s7 = sshll.u32 (%p147_p5), %s1358_s6, 4  ;;  %s1003_s7 = int_to_ptr.vmem [resolvable:$true] %s1002_s7 }
 0x62e   : > { %v1138_v56 = vpop.f32.mrf.mxu0  ;;  %1186 = vmatpush3.bf16.msra.mxu0 (%p147_p5), %v1254_v53  ;;  %p1288_p7 = scmp.lt.s32.totalorder (%p147_p5), %s1003_s7, %s1003_s7 }
 0x65d   : > { %v515_v57 = vpop.f32.mrf.mxu0 }
 0x65e   : > { %v1075_v58 = vpack.c.bf16 %v515_v57, %v515_v57 }
 0x65f   : > { %v1149_v59 = vpop.f32.mrf.mxu0 }
 0x660   : > { %525 = vrot.lane.b32.xlu0 %v1075_v58, %s1356_s29 }
 0x661   : > { %v518_v15 = vpop.f32.mrf.mxu0 }
 0x663   : > { %v1150_v60 = vpop.f32.mrf.mxu0 }
 0x665   : > { %v641_v61 = vpop.f32.mrf.mxu0 }
 0x666   : > { %v1076_v62 = vpack.c.bf16 %v641_v61, %v641_v61 }
 0x667   : > { %v1161_v63 = vpop.f32.mrf.mxu0 }
 0x668   : > { %651 = vrot.lane.b32.xlu1 %v1076_v62, %s1357_s2 }
 0x669   : > { %v644_v1 = vpop.f32.mrf.mxu0 }
 0x66b   : > { %v1162_v2 = vpop.f32.mrf.mxu0 }
 0x69d   : > { %v400_v5 = vpop.permute.xlu1 %399 }
 0x69e   : > { %403 = vst.msk [vmem:[%s1536_s5] sm:$0xf] %vm402_vm7, %v400_v5 }
 0x6d2   : > { %v526_v6 = vpop.permute.xlu0 %525 }
 0x6d3   : > { %529 = vst.msk [vmem:[%s1536_s5] sm:$0xf] %vm528_vm8, %v526_v6 }
 0x6d7   :  { %149 = sbr.rel (!%p147_p5) target bundleno = 226 (0xe2), region = 94 }
 0x6da   : > { %v652_v7 = vpop.permute.xlu1 %651 }
 0x6db   : > { %655 = vst.msk [vmem:[%s1536_s5] sm:$0xf] %vm654_vm9, %v652_v7 }
 0x6e2   :  { %v1248_v10 = vld [vmem:[#allocation3] sm:$0xff]  }
 0x6e3   :  { %1168 = vmatmul.mubr.msk.bf16.vlgmr.msra.gmra.mxu1 %vm89_vm1, %v1248_v10 }
 0x6e4   :  { %1175 = vmatprep.mubr.msk.bf16.mxu1 %vm1341_vm0, %v1340_v0  ;;  %1172 = vmatpush3.bf16.msra.mxu1 %v1249_v33 }
 0x6e5   :  { %1173 = vmatprep.subr.bf16.mxu1 %v1340_v0  ;;  %v1064_v0 = vld [vmem:[%s1652_s8] ss:$0 sm:$0xff]  ;;  %s1283_s8 = scalar_lea.vmem %s1003_s7, 256 }
 0x6e6   :  { %p1284_p6 = scmp.ne.s32.totalorder %s1003_s7, %s1283_s8  ;;  %p1289_p8 = scmp.lt.s32.totalorder %s1283_s8, %s1283_s8 }
 0x6e8   :  { %p1290_p9 = por %p1289_p8, %p1288_p7 }
 0x6ea   :  { %p1291_p10 = pnand %p1290_p9, %p1284_p6 }
 0x7a3   :  { %v725_v12 = vpop.f32.mrf.mxu1 }
 0x7a4   :  { %v726_v13 = vadd.f32 %v1053_v11, %v725_v12 }
 0x7a5   :  { %v1169_v14 = vpop.f32.mrf.mxu1 }
 0x7a6   :  { %v732_v16 = vadd.f32 %v726_v13, %v1455_v3 }
 0x7a7   :  { %v728_v17 = vpop.f32.mrf.mxu1 }
 0x7a8   :  { %v729_v18 = vadd.f32 %v1053_v11, %v728_v17  ;;  %v736_v19 = vsel %vm89_vm1, %v732_v16, 0.0 }
 0x7a9   :  { %737 = vadd.xlane.f32.xlu0 %v736_v19  ;;  %v1170_v21 = vpop.f32.mrf.mxu1 }
 0x7aa   :  { %v733_v22 = vadd.f32 %v729_v18, %v1460_v4  ;;  %v1250_v4 = vld [vmem:[#allocation4] sm:$0xff]  }
 0x7ab   :  { %1174 = vmatpush3.bf16.msra.mxu1 %v1250_v4 }
 0x7ac   :  { %v739_v23 = vsel %vm89_vm1, %v733_v22, 0.0 }
 0x7ad   :  { %740 = vadd.xlane.f32.xlu0 %v739_v23 }
 0x832   :  { %v738_v24 = vpop.xlane.xlu0 %737 }
 0x833   :  { %v743_v25 = vmul.f32 0.03125, %v738_v24 }
 0x835   :  { %v745_v26 = vsub.f32 %v732_v16, %v743_v25 }
 0x836   :  { %v741_v28 = vpop.xlane.xlu0 %740 }
 0x837   :  { %v744_v29 = vmul.f32 0.03125, %v741_v28  ;;  %v747_v30 = vmul.f32 %v745_v26, %v745_v26 }
 0x839   :  { %v746_v31 = vsub.f32 %v733_v22, %v744_v29  ;;  %v749_v3 = vsel %vm89_vm1, %v747_v30, 0.0 }
 0x83a   :  { %750 = vadd.xlane.f32.xlu1 %v749_v3 }
 0x83b   :  { %v748_v20 = vmul.f32 %v746_v31, %v746_v31 }
 0x83d   :  { %v752_v32 = vsel %vm89_vm1, %v748_v20, 0.0 }
 0x83e   :  { %753 = vadd.xlane.f32.xlu1 %v752_v32 }
 0x8c3   :  { %v751_v35 = vpop.xlane.xlu1 %750 }
 0x8c4   :  { %v755_v27 = vmul.f32 0.03125, %v751_v35 }
 0x8c6   :  { %v757_v36 = vadd.f32 1e-05, %v755_v27 }
 0x8c7   :  { %v754_v37 = vpop.xlane.xlu1 %753 }
 0x8c8   :  { %1255 = vrsqrt.f32 %v757_v36  ;;  %v756_v38 = vmul.f32 0.03125, %v754_v37 }
 0x8ca   :  { %v758_v40 = vadd.f32 1e-05, %v756_v38 }
 0x8cc   :  { %1257 = vrsqrt.f32 %v758_v40 }
 0x8d5   :  { %v1256_v41 = vpop.eup %1255 }
 0x8d6   :  { %v761_v42 = vmul.f32 %v1256_v41, %v745_v26 }
 0x8d8   :  { %v769_v46 = vmul.f32 %v1058_v43, %v761_v42 }
 0x8d9   :  { %v1258_v44 = vpop.eup %1257 }
 0x8da   :  { %v762_v45 = vmul.f32 %v1258_v44, %v746_v31  ;;  %v777_v49 = vadd.f32 %v1059_v47, %v769_v46 }
 0x8dc   :  { %v770_v48 = vmul.f32 %v1058_v43, %v762_v45 }
 0x8de   :  { %v778_v50 = vadd.f32 %v1059_v47, %v770_v48 }
 0x8e0   :  { %v779_v51 = vpack.c.bf16 %v778_v50, %v777_v49 }
 0x8e2   :  { %1176 = vmatmul.mubr.msk.bf16.vlgmr.msra.gmra.mxu1 %vm89_vm1, %v779_v51 }
 0x9a2   :  { %v840_v55 = vpop.f32.mrf.mxu1 }
 0x9a3   :  { %v841_v57 = vadd.f32 %v1060_v54, %v840_v55 }
 0x9a4   :  { %v1177_v56 = vpop.f32.mrf.mxu1 }
 0x9a5   :  { %v847_v60 = vmax.f32 %v841_v57, 0.0 }
 0x9a6   :  { %v843_v58 = vpop.f32.mrf.mxu1 }
 0x9a7   :  { %v844_v59 = vadd.f32 %v1060_v54, %v843_v58 }
 0x9a8   :  { %v1178_v15 = vpop.f32.mrf.mxu1 }
 0x9a9   :  { %v848_v61 = vmax.f32 %v844_v59, 0.0 }
 0x9ab   :  { %v849_v62 = vpack.c.bf16 %v848_v61, %v847_v60 }
 0x9ad   :  { %1188 = vmatmul.mubr.msk.bf16.vlgmr.msra.gmra.mxu0 %vm889_vm10, %v849_v62 }
 0xa6d   :  { %v927_v63 = vpop.f32.mrf.mxu0 }
 0xa6e   :  { %v928_v1 = vadd.f32 %v1064_v0, %v927_v63 }
 0xa6f   :  { %v1189_v2 = vpop.f32.mrf.mxu0 }
 0xa70   :  { %v934_v5 = vadd.f32 %v928_v1, %v777_v49 }
 0xa71   :  { %v930_v6 = vpop.f32.mrf.mxu0 }
 0xa72   :  { %v931_v7 = vadd.f32 %v1064_v0, %v930_v6  ;;  %v938_v8 = vsel %vm89_vm1, %v934_v5, 0.0 }
 0xa73   :  { %939 = vadd.xlane.f32.xlu0 %v938_v8  ;;  %v1190_v9 = vpop.f32.mrf.mxu0 }
 0xa74   :  { %v935_v10 = vadd.f32 %v931_v7, %v778_v50 }
 0xa76   :  { %v941_v11 = vsel %vm89_vm1, %v935_v10, 0.0 }
 0xa77   :  { %942 = vadd.xlane.f32.xlu1 %v941_v11 }
 0xafc   :  { %v940_v12 = vpop.xlane.xlu0 %939 }
 0xafd   :  { %v944_v13 = vmul.f32 0.03125, %v940_v12 }
 0xaff   :  { %v946_v14 = vsub.f32 %v934_v5, %v944_v13 }
 0xb00   :  { %v943_v16 = vpop.xlane.xlu1 %942 }
 0xb01   :  { %v945_v17 = vmul.f32 0.03125, %v943_v16  ;;  %v948_v18 = vmul.f32 %v946_v14, %v946_v14 }
 0xb03   :  { %v947_v19 = vsub.f32 %v935_v10, %v945_v17  ;;  %v950_v21 = vsel %vm89_vm1, %v948_v18, 0.0 }
 0xb04   :  { %951 = vadd.xlane.f32.xlu0 %v950_v21 }
 0xb05   :  { %v949_v22 = vmul.f32 %v947_v19, %v947_v19 }
 0xb07   :  { %v953_v23 = vsel %vm89_vm1, %v949_v22, 0.0 }
 0xb08   :  { %954 = vadd.xlane.f32.xlu1 %v953_v23 }
 0xb09   :  { %1294 = shalt.err (!%p1291_p10)
}
 0xb0a   :  { %s1359_s30 = smov 128   ;;  %s1360_s15 = smov 8   ;;  %v1070_v3 = vld [vmem:[%s1655_s11] ss:$0 sm:$0xff]  ;;  %vm982_vm11 = vcmask 257024  }
 0xb0b   :  { %1008 = dma.vmem_to_hbm [thread:$0]  %s1003_s7, 256, %s1658_s14, [#allocation9], %s1359_s30, %s1359_s30, %s1360_s15  }
 0xb0c   :  { %v1071_v32 = vld [vmem:[%s1656_s12] ss:$0 sm:$0xff]  ;;  %s1361_s14 = smov [#allocation7]  }
 0xb0d   :  { %s990_s21 = sshll.u32 %s1361_s14, 4  ;;  %s991_s21 = int_to_ptr.vmem [resolvable:$true] %s990_s21 }
 0xb0e   :  { %s1303_s11 = scalar_lea.vmem %s991_s21, 128  ;;  %p1308_p12 = scmp.lt.s32.totalorder %s991_s21, %s991_s21 }
 0xb0f   :  { %p1304_p11 = scmp.ne.s32.totalorder %s991_s21, %s1303_s11  ;;  %p1309_p13 = scmp.lt.s32.totalorder %s1303_s11, %s1303_s11 }
 0xb11   :  { %p1310_p0 = por %p1309_p13, %p1308_p12 }
 0xb13   :  { %p1311_p1 = pnand %p1310_p0, %p1304_p11 }
 0xb8d   :  { %v952_v24 = vpop.xlane.xlu0 %951 }
 0xb8e   :  { %v956_v25 = vmul.f32 0.03125, %v952_v24 }
 0xb90   :  { %v958_v26 = vadd.f32 1e-05, %v956_v25 }
 0xb91   :  { %v955_v28 = vpop.xlane.xlu1 %954 }
 0xb92   :  { %1259 = vrsqrt.f32 %v958_v26  ;;  %v957_v29 = vmul.f32 0.03125, %v955_v28 }
 0xb94   :  { %v959_v30 = vadd.f32 1e-05, %v957_v29 }
 0xb96   :  { %1261 = vrsqrt.f32 %v959_v30 }
 0xb9f   :  { %v1260_v31 = vpop.eup %1259 }
 0xba0   :  { %v962_v20 = vmul.f32 %v1260_v31, %v946_v14 }
 0xba2   :  { %v970_v33 = vmul.f32 %v1070_v3, %v962_v20 }
 0xba3   :  { %v1262_v4 = vpop.eup %1261 }
 0xba4   :  { %v963_v34 = vmul.f32 %v1262_v4, %v947_v19  ;;  %v978_v35 = vadd.f32 %v1071_v32, %v970_v33 }
 0xba6   :  { %v971_v27 = vmul.f32 %v1070_v3, %v963_v34  ;;  %v980_v36 = vpack.c.bf16 %v978_v35, %v978_v35 }
 0xba8   :  { %v979_v37 = vadd.f32 %v1071_v32, %v971_v27  ;;  %983 = vst.msk [vmem:[#allocation7] sm:$0xf] %vm982_vm11, %v980_v36 }
 0xbaa   :  { %v981_v38 = vpack.c.bf16 %v979_v37, %v979_v37 }
 0xbac   :  { %984 = vst.msk [vmem:[#allocation7 + $0x4] sm:$0xf] %vm982_vm11, %v981_v38 }
 0xbad   :  { %1314 = shalt.err (!%p1311_p1)
}
 0xbae   :  { %996 = dma.vmem_to_hbm [thread:$0]  %s991_s21, 128, %s1657_s13, [#allocation6], %s1338_s16, %s1338_s16, %s1339_s17  }
 0xbaf   :  { %1329 = dma.done.wait [#allocation6], 128  }
 0xbb0   :  { %1330 = vsyncadd [#allocation6], 4294967168 }
 0xbb1   :  { %1331 = dma.done.wait [#allocation9], 256  }
 0xbb2   :  { %1332 = vsyncadd [#allocation9], 4294967040 }
 0xbb3   :  { %1015 = vsyncpa [#allocation5], 1 }
 0xbb4   :  { %1016 = vsyncpa [#allocation6], 1 }
 0xbb5   :  { %1017 = vsyncpa [#allocation9], 1 }

// kernel: tpu_custom_call.1
= control target key start
LH: loop header
LB: loop body
LE: loop exit
PB: predicated region body
PF: predicated region fallthrough
CT: control target
= control target key end

     0   :  { %20 = vsyncpa [#allocation5], 0  ;;  %s1644_s0 = inlined_call_operand.vmem [shape: f32[2,8,32], index: 0, kind: input, shape index: {}]   ;;  %s1645_s1 = inlined_call_operand.vmem [shape: bf16[32,96], index: 1, kind: input, shape index: {}]   ;;  %s1646_s2 = inlined_call_operand.vmem [shape: f32[1,96], index: 2, kind: input, shape index: {}]   ;;  %s1647_s3 = inlined_call_operand.vmem [shape: bf16[32,32], index: 3, kind: input, shape index: {}]   ;;  %s1648_s4 = inlined_call_operand.vmem [shape: f32[1,32], index: 4, kind: input, shape index: {}]   ;;  %s1649_s5 = inlined_call_operand.hbm [shape: bf16[32,64], index: 5, kind: input, shape index: {}]   ;;  %s1650_s6 = inlined_call_operand.vmem [shape: f32[1,64], index: 6, kind: input, shape index: {}]   ;;  %s1651_s7 = inlined_call_operand.vmem [shape: bf16[64,32], index: 7, kind: input, shape index: {}]   ;;  %s1652_s8 = inlined_call_operand.vmem [shape: f32[1,32], index: 8, kind: input, shape index: {}]   ;;  %s1653_s9 = inlined_call_operand.vmem [shape: f32[1,32], index: 9, kind: input, shape index: {}]   ;;  %s1654_s10 = inlined_call_operand.vmem [shape: f32[1,32], index: 10, kind: input, shape index: {}]   ;;  %s1655_s11 = inlined_call_operand.vmem [shape: f32[1,32], index: 11, kind: input, shape index: {}]   ;;  %s1656_s12 = inlined_call_operand.vmem [shape: f32[1,32], index: 12, kind: input, shape index: {}]   ;;  %s1657_s13 = inlined_call_operand.hbm [shape: bf16[2,8,32], index: 13, kind: output, shape index: {0}]   ;;  %s1658_s14 = inlined_call_operand.hbm [shape: f32[2,8,8], index: 14, kind: output, shape index: {1}]  }
   0x1   :  { %21 = vsyncpa [#allocation6], 0 }
   0x2   :  { %22 = vsyncpa [#allocation9], 0  ;;  %s1337_s29 = smov [#allocation4]  }
   0x3   :  { %s38_s30 = sshll.u32 %s1337_s29, 4  ;;  %s39_s30 = int_to_ptr.vmem [resolvable:$true] %s38_s30 }
   0x4   :  { %s1271_s15 = scalar_lea.vmem %s39_s30, 256  ;;  %p1276_p1 = scmp.lt.s32.totalorder %s39_s30, %s39_s30 }
   0x5   :  { %p1272_p0 = scmp.ne.s32.totalorder %s39_s30, %s1271_s15  ;;  %p1277_p2 = scmp.lt.s32.totalorder %s1271_s15, %s1271_s15 }
   0x7   :  { %p1278_p3 = por %p1277_p2, %p1276_p1 }
   0x9   :  { %p1279_p4 = pnand %p1278_p3, %p1272_p0 }
   0xb   :  { %1282 = shalt.err (!%p1279_p4)
}
   0xc   :  { %s1338_s16 = smov 64   ;;  %s1339_s17 = smov 4  }
   0xd   :  { %44 = dma.hbm_to_vmem [thread:$0]  %s1649_s5, 256, %s39_s30, [#allocation5], %s1338_s16, %s1338_s16, %s1339_s17  }
   0xe   :  { %1327 = dma.done.wait [#allocation5], 256  }
   0xf   :  { %1328 = vsyncadd [#allocation5], 4294967040  ;;  %v1340_v0 = vmov 0.0   ;;  %vm1341_vm0 = vmmov 0   ;;  %v1224_v1 = vld [vmem:[%s1645_s1 + $0x8] sm:$0xff]   ;;  %v1225_v2 = vld [vmem:[%s1645_s1] sm:$0xff]  }
  0x10   :  { %1107 = vmatprep.subr.bf16.mxu0 %v1340_v0  ;;  %1111 = vmatprep.mubr.msk.bf16.mxu0 %vm1341_vm0, %v1340_v0  ;;  %v1455_v3 = vld [vmem:[%s1644_s0] sm:$0xff]  ;;  %v1460_v4 = vld [vmem:[%s1644_s0 + $0x8] sm:$0xff]  ;;  %vm89_vm1 = vcmask 261120   ;;  %vm142_vm2 = vcmask 781312   ;;  %s1469_s0 = smov 0  }
  0x11   :  { %1108 = vmatpush3.bf16.msra.mxu0 %v1224_v1  ;;  %v65_v5 = vpack.c.bf16 %v1460_v4, %v1455_v3  ;;  %v1029_v6 = vld [vmem:[%s1646_s2] ss:$0 sm:$0xff] }
  0x12   :  { %1109 = vmatprep.subr.bf16.mxu0 %v1340_v0 }
  0x15   :  { %1110 = vmatpush3.bf16.msra.mxu0 %v1225_v2 }
  0x18   :  { %1112 = vmatmul.mubr.msk.bf16.vlgmr.msra.gmra.mxu0 %vm89_vm1, %v65_v5 }
  0xd8   :  { %v127_v7 = vpop.f32.mrf.mxu0 }
  0xd9   :  { %v128_v8 = vadd.f32 %v1029_v6, %v127_v7 }
  0xda   :  { %v1113_v9 = vpop.f32.mrf.mxu0 }
  0xdb   :  { %v1072_v10 = vpack.c.bf16 %v128_v8, %v128_v8 }
  0xdc   :  { %v130_v11 = vpop.f32.mrf.mxu0 }
  0xdd   :  { %143 = vst.msk [vmem:[#allocation2] sm:$0xf] %vm142_vm2, %v1072_v10  ;;  %v131_v12 = vadd.f32 %v1029_v6, %v130_v11 }
  0xde   :  { %v1114_v13 = vpop.f32.mrf.mxu0 }
  0xdf   :  { %v1073_v14 = vpack.c.bf16 %v131_v12, %v131_v12 }
  0xe1   :  { %144 = vst.msk [vmem:[#allocation2 + $0x4] sm:$0xf] %vm142_vm2, %v1073_v14 }
  0xe2 LB: > { %v1342_v15 = vmov 0.0   ;;  %vm1343_vm3 = vmmov 0   ;;  %s1035_s2 = sshll.u32 %s1335_s0, 3  ;;  %s1344_s15 = smov 96   ;;  %vm162_vm4 = vcmask 64512   ;;  %vm229_vm5 = vcmask 1043456   ;;  %s1335_s0 = sphi %s1469_s0, %s150_s0  }
  0xe3   : > { %1115 = vmatprep.subr.bf16.mxu0 %v1342_v15  ;;  %1117 = vmatprep.mubr.msk.bf16.mxu0 %vm1343_vm3, %v1342_v15  ;;  %s1483_s28 = sshra.s32 %s1035_s2, 3  ;;  %s1345_s18 = smov 64   ;;  %vm276_vm6 = vcmask 60416   ;;  %vm402_vm7 = vcmask 126016   ;;  %vm528_vm8 = vcmask 191616   ;;  %vm654_vm9 = vcmask 257216  }
  0xe4   : > { %1121 = vmatprep.subr.bf16.mxu1 %v1342_v15  ;;  %1123 = vmatprep.mubr.msk.bf16.mxu1 %vm1343_vm3, %v1342_v15  ;;  %s1036_s29 = sshll.u32 %s1483_s28, 2  ;;  %s1346_s19 = smov 88  }
  0xe5   : > { %s1488_s30 = scalar_lea.vmem [#allocation2], %s1036_s29  ;;  %s1347_s20 = smov 72  }
  0xe6   : > { %s1348_s21 = smov 120   ;;  %s1349_s22 = smov 80  }
  0xe7   : > { %s1350_s23 = smov 112   ;;  %s1351_s24 = smov 104  }
  0xe8   : > { %v156_v16 = vld [vmem:[%s1488_s30] sm:$0xf]  ;;  %s1536_s5 = scalar_lea.vmem [#allocation3], %s1036_s29  ;;  %s1352_s25 = smov 56  }
  0xe9   : > { %v1037_v17 = vcombine.low %v156_v16, %v156_v16  ;;  %v1497_v20 = vld [vmem:[%s1488_s30] ss:$0 sps:$4 sm:$0xff]   ;;  %s1353_s26 = smov 48   ;;  %s1354_s1 = smov 40  }
  0xea   : > { %v1502_v27 = vld [vmem:[%s1488_s30] ss:$0 sps:$4 sm:$0xff]   ;;  %s656_s27 = scalar_lea.vmem [#allocation8], %s1035_s2  ;;  %s1355_s28 = smov 8  }
  0xeb   : > { %160 = vrot.lane.b32.xlu0 %v1037_v17, %s1344_s15  ;;  %224 = vrot.lane.b32.xlu1 %v1037_v17, %s1345_s18  ;;  %v1510_v35 = vld [vmem:[%s1488_s30] ss:$0 sps:$4 sm:$0xff]   ;;  %s1356_s29 = smov 16   ;;  %s1357_s2 = smov 24  }
  0xec   : > { %s150_s0 = sadd.s32 1, %s1335_s0  }
  0xed   : > { %p147_p5 = scmp.ge.s32.totalorder %s150_s0, 2  }
  0xee   :  { %vm889_vm10 = vcmask (%p147_p5), 523264  }
  0xef   : > { %284 = vrot.lane.b32.xlu1 %v1497_v20, %s1346_s19 }
 0x15d   : > { %v161_v18 = vpop.permute.xlu0 %160  ;;  %v225_v28 = vpop.permute.xlu1 %224 }
 0x15e   : > { %v167_v19 = vsel %vm162_vm4, %v161_v18, 0  ;;  %v231_v29 = vsel %vm229_vm5, %v225_v28, 0 }
 0x15f   : > { %1116 = vmatpush3.bf16.xpose.msra.mxu0 %v167_v19  ;;  %1122 = vmatpush3.bf16.msra.mxu1 %v231_v29 }
 0x160   : > { %1133 = vmatprep.subr.bf16.mxu0 %v1342_v15  ;;  %1127 = vmatprep.subr.bf16.mxu1 %v1342_v15 }
 0x161   : > { %v285_v36 = vpop.permute.xlu1 %284 }
 0x162   : > { %v290_v42 = vsel %vm162_vm4, %v285_v36, 0 }
 0x166   : > { %1118 = vmatmul.mubr.msk.bf16.vlgmr.msra.gmra.mxu0 %vm162_vm4, %v156_v16 }
 0x167   : > { %1135 = vmatprep.mubr.msk.bf16.mxu0 %vm1343_vm3, %v1342_v15 }
 0x226   : > { %v203_v21 = vpop.f32.mrf.mxu0 }
 0x227   : > { %v209_v22 = vmul.f32 0.35355338, %v203_v21 }
 0x228   : > { %v1119_v23 = vpop.f32.mrf.mxu0 }
 0x229   : > { %v210_v24 = vsel %vm162_vm4, %v209_v22, -inf }
 0x22a   : > { %211 = vmax.xlane.f32.xlu0 %v210_v24  ;;  %v206_v25 = vpop.f32.mrf.mxu0 }
 0x22c   : > { %v1120_v26 = vpop.f32.mrf.mxu0 }
 0x240   : > { %536 = vrot.lane.b32.xlu0 %v1502_v27, %s1347_s20 }
 0x2b3   : > { %v212_v30 = vpop.xlane.xlu0 %211 }
 0x2b4   : > { %v213_v31 = vsub.f32 %v209_v22, %v212_v30 }
 0x2b6   : > { %v214_v32 = vmul.f32 1.442695, %v213_v31 }
 0x2b7   : > { %v537_v45 = vpop.permute.xlu0 %536 }
 0x2b8   : > { %1230 = vpow2.f32 %v214_v32  ;;  %v542_v47 = vsel %vm162_vm4, %v537_v45, 0 }
 0x2c5   : > { %v1231_v33 = vpop.eup %1230 }
 0x2c6   : > { %v216_v34 = vsel %vm162_vm4, %v1231_v33, 0.0 }
 0x2c7   : > { %217 = vadd.xlane.f32.xlu1 %v216_v34 }
 0x2d8   : > { %282 = vrot.lane.b32.xlu1 %v1497_v20, %s1348_s21 }
 0x2dc   : > { %410 = vrot.lane.b32.xlu1 %v1510_v35, %s1349_s22 }
 0x2e0   : > { %408 = vrot.lane.b32.xlu1 %v1510_v35, %s1350_s23 }
 0x2e4   : > { %534 = vrot.lane.b32.xlu1 %v1502_v27, %s1351_s24 }
 0x350   : > { %v218_v37 = vpop.xlane.xlu1 %217 }
 0x351   : > { %1232 = vrcp.f32 %v218_v37 }
 0x354   : > { %v283_v40 = vpop.permute.xlu1 %282 }
 0x358   : > { %v411_v43 = vpop.permute.xlu1 %410 }
 0x359   : > { %v416_v44 = vsel %vm162_vm4, %v411_v43, 0 }
 0x35c   : > { %v409_v46 = vpop.permute.xlu1 %408 }
 0x35e   : > { %v1233_v38 = vpop.eup %1232 }
 0x35f   : > { %v1515_v39 = vmul.f32 %v1233_v38, %v1231_v33 }
 0x360   : > { %v535_v48 = vpop.permute.xlu1 %534 }
 0x361   : > { %v223_v41 = vpack.c.bf16 %v1515_v39, %v1515_v39 }
 0x363   : > { %1124 = vmatmul.mubr.msk.bf16.vlgmr.msra.gmra.mxu1 %vm162_vm4, %v223_v41 }
 0x364   : > { %1128 = vmatpush3.bf16.xpose.msra.mxu1 %v290_v42  ;;  %1129 = vmatprep.mubr.msk.bf16.mxu1 %vm1343_vm3, %v1342_v15  ;;  %v221_v42 = vmul.f32 0.25, %v1515_v39 }
 0x365   : > { %1139 = vmatprep.subr.bf16.mxu1 %v1342_v15 }
 0x36b   : > { %1130 = vmatmul.mubr.msk.bf16.vlgmr.msra.gmra.mxu1 %vm162_vm4, %v283_v40 }
 0x36c   : > { %1140 = vmatpush3.bf16.xpose.msra.mxu1 %v416_v44  ;;  %1141 = vmatprep.mubr.msk.bf16.mxu1 %vm1343_vm3, %v1342_v15 }
 0x36d   : > { %1151 = vmatprep.subr.bf16.mxu1 %v1342_v15 }
 0x373   : > { %1142 = vmatmul.mubr.msk.bf16.vlgmr.msra.gmra.mxu1 %vm162_vm4, %v409_v46 }
 0x374   : > { %1152 = vmatpush3.bf16.xpose.msra.mxu1 %v542_v47  ;;  %1153 = vmatprep.mubr.msk.bf16.mxu1 %vm1343_vm3, %v1342_v15 }
 0x375   :  { %1163 = vmatprep.subr.bf16.mxu1 (%p147_p5), %v1340_v0 }
 0x37b   : > { %1154 = vmatmul.mubr.msk.bf16.vlgmr.msra.gmra.mxu1 %vm162_vm4, %v535_v48 }
 0x37c   :  { %1167 = vmatprep.mubr.msk.bf16.mxu1 (%p147_p5), %vm1341_vm0, %v1340_v0 }
 0x423   : > { %v267_v49 = vpop.f32.mrf.mxu1 }
 0x424   : > { %v273_v50 = vpack.c.bf16 %v267_v49, %v267_v49 }
 0x425   : > { %v1125_v51 = vpop.f32.mrf.mxu1 }
 0x426   : > { %277 = vst.msk [vmem:[%s1536_s5] sm:$0xf] %vm276_vm6, %v273_v50 }
 0x427   : > { %v270_v52 = vpop.f32.mrf.mxu1 }
 0x429   : > { %v1126_v53 = vpop.f32.mrf.mxu1 }
 0x42b   : > { %v326_v54 = vpop.f32.mrf.mxu1 }
 0x42c   : > { %v332_v55 = vmul.f32 0.35355338, %v326_v54 }
 0x42d   : > { %v1131_v56 = vpop.f32.mrf.mxu1 }
 0x42e   : > { %v333_v57 = vsel %vm162_vm4, %v332_v55, -inf }
 0x42f   : > { %334 = vmax.xlane.f32.xlu1 %v333_v57  ;;  %v329_v58 = vpop.f32.mrf.mxu1 }
 0x431   : > { %v1132_v59 = vpop.f32.mrf.mxu1 }
 0x433   : > { %v452_v60 = vpop.f32.mrf.mxu1 }
 0x434   : > { %v458_v61 = vmul.f32 0.35355338, %v452_v60 }
 0x435   : > { %v1143_v62 = vpop.f32.mrf.mxu1 }
 0x436   : > { %v459_v63 = vsel %vm162_vm4, %v458_v61, -inf }
 0x437   : > { %460 = vmax.xlane.f32.xlu0 %v459_v63  ;;  %v455_v1 = vpop.f32.mrf.mxu1 }
 0x439   : > { %v1144_v2 = vpop.f32.mrf.mxu1 }
 0x43b   : > { %v578_v5 = vpop.f32.mrf.mxu1 }
 0x43c   : > { %v584_v6 = vmul.f32 0.35355338, %v578_v5 }
 0x43d   : > { %v1155_v7 = vpop.f32.mrf.mxu1 }
 0x43e   : > { %v585_v8 = vsel %vm162_vm4, %v584_v6, -inf }
 0x43f   : > { %586 = vmax.xlane.f32.xlu1 %v585_v8  ;;  %v581_v9 = vpop.f32.mrf.mxu1  ;;  %v1246_v8 = vld [vmem:[%s1647_s3 + $0x8] sm:$0xff] (%p147_p5)  }
 0x440   :  { %1164 = vmatpush3.bf16.msra.mxu1 (%p147_p5), %v1246_v8  ;;  %v1247_v9 = vld [vmem:[%s1647_s3] sm:$0xff] (%p147_p5)  }
 0x441   : > { %v1156_v10 = vpop.f32.mrf.mxu1  ;;  %1165 = vmatprep.subr.bf16.mxu1 (%p147_p5), %v1340_v0 }
 0x444   :  { %1166 = vmatpush3.bf16.msra.mxu1 (%p147_p5), %v1247_v9 }
 0x445   :  { %1171 = vmatprep.subr.bf16.mxu1 (%p147_p5), %v1340_v0 }
 0x4b8   : > { %v335_v11 = vpop.xlane.xlu1 %334 }
 0x4b9   : > { %v336_v12 = vsub.f32 %v332_v55, %v335_v11  ;;  %v1053_v11 = vld [vmem:[%s1648_s4] ss:$0 sm:$0xff] (%p147_p5) }
 0x4bb   : > { %v337_v13 = vmul.f32 1.442695, %v336_v12 }
 0x4bd   : > { %1234 = vpow2.f32 %v337_v13 }
 0x4c0   : > { %v461_v23 = vpop.xlane.xlu0 %460 }
 0x4c1   : > { %v462_v24 = vsub.f32 %v458_v61, %v461_v23 }
 0x4c3   : > { %v463_v25 = vmul.f32 1.442695, %v462_v24 }
 0x4c8   : > { %v587_v14 = vpop.xlane.xlu1 %586 }
 0x4c9   : > { %v588_v16 = vsub.f32 %v584_v6, %v587_v14 }
 0x4ca   : > { %v1235_v17 = vpop.eup %1234 }
 0x4cb   : > { %v589_v18 = vmul.f32 1.442695, %v588_v16  ;;  %v339_v19 = vsel %vm162_vm4, %v1235_v17, 0.0 }
 0x4cc   : > { %340 = vadd.xlane.f32.xlu1 %v339_v19 }
 0x4cd   : > { %1236 = vpow2.f32 %v589_v18 }
 0x4ce   : > { %1238 = vpow2.f32 %v463_v25 }
 0x4da   : > { %v1237_v21 = vpop.eup %1236 }
 0x4db   : > { %v591_v22 = vsel %vm162_vm4, %v1237_v21, 0.0  ;;  %v1239_v26 = vpop.eup %1238 }
 0x4dc   : > { %592 = vadd.xlane.f32.xlu0 %v591_v22  ;;  %v465_v28 = vsel %vm162_vm4, %v1239_v26, 0.0 }
 0x4dd   : > { %347 = vrot.lane.b32.xlu1 %v1497_v20, %s1352_s25 }
 0x4f2   : > { %473 = vrot.lane.b32.xlu0 %v1510_v35, %s1353_s26 }
 0x501   : > { %466 = vadd.xlane.f32.xlu1 %v465_v28 }
 0x512   : > { %599 = vrot.lane.b32.xlu1 %v1502_v27, %s1354_s1 }
 0x555   : > { %v341_v29 = vpop.xlane.xlu1 %340 }
 0x556   : > { %1240 = vrcp.f32 %v341_v29 }
 0x559   : > { %v348_v30 = vpop.permute.xlu1 %347 }
 0x55a   : > { %v353_v31 = vsel %vm229_vm5, %v348_v30, 0 }
 0x55b   : > { %1134 = vmatpush3.bf16.msra.mxu0 %v353_v31 }
 0x55c   : > { %1145 = vmatprep.subr.bf16.mxu0 %v1342_v15 }
 0x563   : > { %v1241_v20 = vpop.eup %1240 }
 0x564   : > { %v343_v32 = vmul.f32 %v1241_v20, %v1235_v17 }
 0x565   : > { %v593_v33 = vpop.xlane.xlu0 %592 }
 0x566   : > { %v346_v34 = vpack.c.bf16 %v343_v32, %v343_v32  ;;  %1242 = vrcp.f32 %v593_v33  ;;  %v344_v38 = vmul.f32 0.25, %v343_v32  ;;  %v1249_v33 = vld [vmem:[#allocation4 + $0x8] sm:$0xff] (%p147_p5)  }
 0x568   : > { %1136 = vmatmul.mubr.msk.bf16.vlgmr.msra.gmra.mxu0 %vm162_vm4, %v346_v34  ;;  %v345_v45 = vadd.f32 %v344_v38, %v221_v42  ;;  %v1251_v34 = vld [vmem:[%s1651_s7 + $0x18] sm:$0xff] (%p147_p5)  }
 0x569   : > { %v474_v35 = vpop.permute.xlu0 %473  ;;  %1147 = vmatprep.mubr.msk.bf16.mxu0 %vm1343_vm3, %v1342_v15 }
 0x56a   : > { %v479_v27 = vsel %vm229_vm5, %v474_v35, 0 }
 0x56b   : > { %1146 = vmatpush3.bf16.msra.mxu0 %v479_v27 }
 0x56c   : > { %1157 = vmatprep.subr.bf16.mxu0 %v1342_v15 }
 0x573   : > { %v1243_v37 = vpop.eup %1242 }
 0x574   : > { %v595_v44 = vmul.f32 %v1243_v37, %v1237_v21 }
 0x576   : > { %v596_v50 = vmul.f32 0.25, %v595_v44  ;;  %v598_v39 = vpack.c.bf16 %v595_v44, %v595_v44 }
 0x58a   : > { %v467_v36 = vpop.xlane.xlu1 %466 }
 0x58b   : > { %1244 = vrcp.f32 %v467_v36 }
 0x58e   : > { %v600_v41 = vpop.permute.xlu1 %599 }
 0x58f   : > { %v605_v46 = vsel %vm229_vm5, %v600_v41, 0 }
 0x598   : > { %v1245_v40 = vpop.eup %1244 }
 0x599   : > { %v469_v43 = vmul.f32 %v1245_v40, %v1239_v26 }
 0x59b   : > { %v470_v47 = vmul.f32 0.25, %v469_v43  ;;  %v472_v48 = vpack.c.bf16 %v469_v43, %v469_v43  ;;  %v1058_v43 = vld [vmem:[%s1653_s9] ss:$0 sm:$0xff] (%p147_p5) }
 0x59d   : > { %v471_v49 = vadd.f32 %v470_v47, %v345_v45  ;;  %1148 = vmatmul.mubr.msk.bf16.vlgmr.msra.gmra.mxu0 %vm162_vm4, %v472_v48  ;;  %v1059_v47 = vld [vmem:[%s1654_s10] ss:$0 sm:$0xff] (%p147_p5) }
 0x59e   : > { %1158 = vmatpush3.bf16.msra.mxu0 %v605_v46  ;;  %1159 = vmatprep.mubr.msk.bf16.mxu0 %vm1343_vm3, %v1342_v15 }
 0x59f   : > { %v597_v51 = vadd.f32 %v596_v50, %v471_v49  ;;  %1179 = vmatprep.subr.bf16.mxu0 (%p147_p5), %v1340_v0 }
 0x5a1   : > { %657 = vst.msk [vmem:[%s656_s27] sm:$0xff] %vm162_vm4, %v597_v51 }
 0x5a5   : > { %1160 = vmatmul.mubr.msk.bf16.vlgmr.msra.gmra.mxu0 %vm162_vm4, %v598_v39  ;;  %v1252_v39 = vld [vmem:[%s1651_s7 + $0x10] sm:$0xff] (%p147_p5)  }
 0x5a6   :  { %1187 = vmatprep.mubr.msk.bf16.mxu0 (%p147_p5), %vm1341_vm0, %v1340_v0  ;;  %1180 = vmatpush3.bf16.msra.mxu0 (%p147_p5), %v1251_v34 }
 0x5a7   :  { %1181 = vmatprep.subr.bf16.mxu0 (%p147_p5), %v1340_v0 }
 0x5aa   :  { %1182 = vmatpush3.bf16.msra.mxu0 (%p147_p5), %v1252_v39 }
 0x5ab   :  { %1183 = vmatprep.subr.bf16.mxu0 (%p147_p5), %v1340_v0 }
 0x628   : > { %v389_v52 = vpop.f32.mrf.mxu0 }
 0x629   : > { %v1074_v53 = vpack.c.bf16 %v389_v52, %v389_v52  ;;  %v1253_v52 = vld [vmem:[%s1651_s7 + $0x8] sm:$0xff] (%p147_p5)  }
 0x62a   : > { %v1137_v54 = vpop.f32.mrf.mxu0  ;;  %1184 = vmatpush3.bf16.msra.mxu0 (%p147_p5), %v1253_v52 }
 0x62b   : > { %399 = vrot.lane.b32.xlu1 %v1074_v53, %s1355_s28  ;;  %1185 = vmatprep.subr.bf16.mxu0 (%p147_p5), %v1340_v0  ;;  %v1254_v53 = vld [vmem:[%s1651_s7] sm:$0xff] (%p147_p5)  }
 0x62c   : > { %v392_v55 = vpop.f32.mrf.mxu0  ;;  %v1060_v54 = vld [vmem:[%s1650_s6] ss:$0 sm:$0xff] (%p147_p5)  ;;  %s1358_s6 = smov (%p147_p5), [#allocation8]  }
 0x62d   :  { %s1002_s7 = sshll.u32 (%p147_p5), %s1358_s6, 4  ;;  %s1003_s7 = int_to_ptr.vmem [resolvable:$true] %s1002_s7 }
 0x62e   : > { %v1138_v56 = vpop.f32.mrf.mxu0  ;;  %1186 = vmatpush3.bf16.msra.mxu0 (%p147_p5), %v1254_v53  ;;  %p1288_p7 = scmp.lt.s32.totalorder (%p147_p5), %s1003_s7, %s1003_s7 }
 0x65d   : > { %v515_v57 = vpop.f32.mrf.mxu0 }
 0x65e   : > { %v1075_v58 = vpack.c.bf16 %v515_v57, %v515_v57 }
 0x65f   : > { %v1149_v59 = vpop.f32.mrf.mxu0 }
 0x660   : > { %525 = vrot.lane.b32.xlu0 %v1075_v58, %s1356_s29 }
 0x661   : > { %v518_v15 = vpop.f32.mrf.mxu0 }
 0x663   : > { %v1150_v60 = vpop.f32.mrf.mxu0 }
 0x665   : > { %v641_v61 = vpop.f32.mrf.mxu0 }
 0x666   : > { %v1076_v62 = vpack.c.bf16 %v641_v61, %v641_v61 }
 0x667   : > { %v1161_v63 = vpop.f32.mrf.mxu0 }
 0x668   : > { %651 = vrot.lane.b32.xlu1 %v1076_v62, %s1357_s2 }
 0x669   : > { %v644_v1 = vpop.f32.mrf.mxu0 }
 0x66b   : > { %v1162_v2 = vpop.f32.mrf.mxu0 }
 0x69d   : > { %v400_v5 = vpop.permute.xlu1 %399 }
 0x69e   : > { %403 = vst.msk [vmem:[%s1536_s5] sm:$0xf] %vm402_vm7, %v400_v5 }
 0x6d2   : > { %v526_v6 = vpop.permute.xlu0 %525 }
 0x6d3   : > { %529 = vst.msk [vmem:[%s1536_s5] sm:$0xf] %vm528_vm8, %v526_v6 }
 0x6d7   :  { %149 = sbr.rel (!%p147_p5) target bundleno = 226 (0xe2), region = 94 }
 0x6da   : > { %v652_v7 = vpop.permute.xlu1 %651 }
 0x6db   : > { %655 = vst.msk [vmem:[%s1536_s5] sm:$0xf] %vm654_vm9, %v652_v7 }
 0x6e2   :  { %v1248_v10 = vld [vmem:[#allocation3] sm:$0xff]  }
 0x6e3   :  { %1168 = vmatmul.mubr.msk.bf16.vlgmr.msra.gmra.mxu1 %vm89_vm1, %v1248_v10 }
 0x6e4   :  { %1175 = vmatprep.mubr.msk.bf16.mxu1 %vm1341_vm0, %v1340_v0  ;;  %1172 = vmatpush3.bf16.msra.mxu1 %v1249_v33 }
 0x6e5   :  { %1173 = vmatprep.subr.bf16.mxu1 %v1340_v0  ;;  %v1064_v0 = vld [vmem:[%s1652_s8] ss:$0 sm:$0xff]  ;;  %s1283_s8 = scalar_lea.vmem %s1003_s7, 256 }
 0x6e6   :  { %p1284_p6 = scmp.ne.s32.totalorder %s1003_s7, %s1283_s8  ;;  %p1289_p8 = scmp.lt.s32.totalorder %s1283_s8, %s1283_s8 }
 0x6e8   :  { %p1290_p9 = por %p1289_p8, %p1288_p7 }
 0x6ea   :  { %p1291_p10 = pnand %p1290_p9, %p1284_p6 }
 0x7a3   :  { %v725_v12 = vpop.f32.mrf.mxu1 }
 0x7a4   :  { %v726_v13 = vadd.f32 %v1053_v11, %v725_v12 }
 0x7a5   :  { %v1169_v14 = vpop.f32.mrf.mxu1 }
 0x7a6   :  { %v732_v16 = vadd.f32 %v726_v13, %v1455_v3 }
 0x7a7   :  { %v728_v17 = vpop.f32.mrf.mxu1 }
 0x7a8   :  { %v729_v18 = vadd.f32 %v1053_v11, %v728_v17  ;;  %v736_v19 = vsel %vm89_vm1, %v732_v16, 0.0 }
 0x7a9   :  { %737 = vadd.xlane.f32.xlu0 %v736_v19  ;;  %v1170_v21 = vpop.f32.mrf.mxu1 }
 0x7aa   :  { %v733_v22 = vadd.f32 %v729_v18, %v1460_v4  ;;  %v1250_v4 = vld [vmem:[#allocation4] sm:$0xff]  }
 0x7ab   :  { %1174 = vmatpush3.bf16.msra.mxu1 %v1250_v4 }
 0x7ac   :  { %v739_v23 = vsel %vm89_vm1, %v733_v22, 0.0 }
 0x7ad   :  { %740 = vadd.xlane.f32.xlu0 %v739_v23 }
 0x832   :  { %v738_v24 = vpop.xlane.xlu0 %737 }
 0x833   :  { %v743_v25 = vmul.f32 0.03125, %v738_v24 }
 0x835   :  { %v745_v26 = vsub.f32 %v732_v16, %v743_v25 }
 0x836   :  { %v741_v28 = vpop.xlane.xlu0 %740 }
 0x837   :  { %v744_v29 = vmul.f32 0.03125, %v741_v28  ;;  %v747_v30 = vmul.f32 %v745_v26, %v745_v26 }
 0x839   :  { %v746_v31 = vsub.f32 %v733_v22, %v744_v29  ;;  %v749_v3 = vsel %vm89_vm1, %v747_v30, 0.0 }
 0x83a   :  { %750 = vadd.xlane.f32.xlu1 %v749_v3 }
 0x83b   :  { %v748_v20 = vmul.f32 %v746_v31, %v746_v31 }
 0x83d   :  { %v752_v32 = vsel %vm89_vm1, %v748_v20, 0.0 }
 0x83e   :  { %753 = vadd.xlane.f32.xlu1 %v752_v32 }
 0x8c3   :  { %v751_v35 = vpop.xlane.xlu1 %750 }
 0x8c4   :  { %v755_v27 = vmul.f32 0.03125, %v751_v35 }
 0x8c6   :  { %v757_v36 = vadd.f32 1e-05, %v755_v27 }
 0x8c7   :  { %v754_v37 = vpop.xlane.xlu1 %753 }
 0x8c8   :  { %1255 = vrsqrt.f32 %v757_v36  ;;  %v756_v38 = vmul.f32 0.03125, %v754_v37 }
 0x8ca   :  { %v758_v40 = vadd.f32 1e-05, %v756_v38 }
 0x8cc   :  { %1257 = vrsqrt.f32 %v758_v40 }
 0x8d5   :  { %v1256_v41 = vpop.eup %1255 }
 0x8d6   :  { %v761_v42 = vmul.f32 %v1256_v41, %v745_v26 }
 0x8d8   :  { %v769_v46 = vmul.f32 %v1058_v43, %v761_v42 }
 0x8d9   :  { %v1258_v44 = vpop.eup %1257 }
 0x8da   :  { %v762_v45 = vmul.f32 %v1258_v44, %v746_v31  ;;  %v777_v49 = vadd.f32 %v1059_v47, %v769_v46 }
 0x8dc   :  { %v770_v48 = vmul.f32 %v1058_v43, %v762_v45 }
 0x8de   :  { %v778_v50 = vadd.f32 %v1059_v47, %v770_v48 }
 0x8e0   :  { %v779_v51 = vpack.c.bf16 %v778_v50, %v777_v49 }
 0x8e2   :  { %1176 = vmatmul.mubr.msk.bf16.vlgmr.msra.gmra.mxu1 %vm89_vm1, %v779_v51 }
 0x9a2   :  { %v840_v55 = vpop.f32.mrf.mxu1 }
 0x9a3   :  { %v841_v57 = vadd.f32 %v1060_v54, %v840_v55 }
 0x9a4   :  { %v1177_v56 = vpop.f32.mrf.mxu1 }
 0x9a5   :  { %v847_v60 = vmax.f32 %v841_v57, 0.0 }
 0x9a6   :  { %v843_v58 = vpop.f32.mrf.mxu1 }
 0x9a7   :  { %v844_v59 = vadd.f32 %v1060_v54, %v843_v58 }
 0x9a8   :  { %v1178_v15 = vpop.f32.mrf.mxu1 }
 0x9a9   :  { %v848_v61 = vmax.f32 %v844_v59, 0.0 }
 0x9ab   :  { %v849_v62 = vpack.c.bf16 %v848_v61, %v847_v60 }
 0x9ad   :  { %1188 = vmatmul.mubr.msk.bf16.vlgmr.msra.gmra.mxu0 %vm889_vm10, %v849_v62 }
 0xa6d   :  { %v927_v63 = vpop.f32.mrf.mxu0 }
 0xa6e   :  { %v928_v1 = vadd.f32 %v1064_v0, %v927_v63 }
 0xa6f   :  { %v1189_v2 = vpop.f32.mrf.mxu0 }
 0xa70   :  { %v934_v5 = vadd.f32 %v928_v1, %v777_v49 }
 0xa71   :  { %v930_v6 = vpop.f32.mrf.mxu0 }
 0xa72   :  { %v931_v7 = vadd.f32 %v1064_v0, %v930_v6  ;;  %v938_v8 = vsel %vm89_vm1, %v934_v5, 0.0 }
 0xa73   :  { %939 = vadd.xlane.f32.xlu0 %v938_v8  ;;  %v1190_v9 = vpop.f32.mrf.mxu0 }
 0xa74   :  { %v935_v10 = vadd.f32 %v931_v7, %v778_v50 }
 0xa76   :  { %v941_v11 = vsel %vm89_vm1, %v935_v10, 0.0 }
 0xa77   :  { %942 = vadd.xlane.f32.xlu1 %v941_v11 }
 0xafc   :  { %v940_v12 = vpop.xlane.xlu0 %939 }
 0xafd   :  { %v944_v13 = vmul.f32 0.03125, %v940_v12 }
 0xaff   :  { %v946_v14 = vsub.f32 %v934_v5, %v944_v13 }
 0xb00   :  { %v943_v16 = vpop.xlane.xlu1 %942 }
 0xb01   :  { %v945_v17 = vmul.f32 0.03125, %v943_v16  ;;  %v948_v18 = vmul.f32 %v946_v14, %v946_v14 }
 0xb03   :  { %v947_v19 = vsub.f32 %v935_v10, %v945_v17  ;;  %v950_v21 = vsel %vm89_vm1, %v948_v18, 0.0 }
 0xb04   :  { %951 = vadd.xlane.f32.xlu0 %v950_v21 }
 0xb05   :  { %v949_v22 = vmul.f32 %v947_v19, %v947_v19 }
 0xb07   :  { %v953_v23 = vsel %vm89_vm1, %v949_v22, 0.0 }
 0xb08   :  { %954 = vadd.xlane.f32.xlu1 %v953_v23 }
 0xb09   :  { %1294 = shalt.err (!%p1291_p10)
}
 0xb0a   :  { %s1359_s30 = smov 128   ;;  %s1360_s15 = smov 8   ;;  %v1070_v3 = vld [vmem:[%s1655_s11] ss:$0 sm:$0xff]  ;;  %vm982_vm11 = vcmask 257024  }
 0xb0b   :  { %1008 = dma.vmem_to_hbm [thread:$0]  %s1003_s7, 256, %s1658_s14, [#allocation9], %s1359_s30, %s1359_s30, %s1360_s15  }
 0xb0c   :  { %v1071_v32 = vld [vmem:[%s1656_s12] ss:$0 sm:$0xff]  ;;  %s1361_s14 = smov [#allocation7]  }
 0xb0d   :  { %s990_s21 = sshll.u32 %s1361_s14, 4  ;;  %s991_s21 = int_to_ptr.vmem [resolvable:$true] %s990_s21 }
 0xb0e   :  { %s1303_s11 = scalar_lea.vmem %s991_s21, 128  ;;  %p1308_p12 = scmp.lt.s32.totalorder %s991_s21, %s991_s21 }
 0xb0f   :  { %p1304_p11 = scmp.ne.s32.totalorder %s991_s21, %s1303_s11  ;;  %p1309_p13 = scmp.lt.s32.totalorder %s1303_s11, %s1303_s11 }
 0xb11   :  { %p1310_p0 = por %p1309_p13, %p1308_p12 }
 0xb13   :  { %p1311_p1 = pnand %p1310_p0, %p1304_p11 }
 0xb8d   :  { %v952_v24 = vpop.xlane.xlu0 %951 }
 0xb8e   :  { %v956_v25 = vmul.f32 0.03125, %v952_v24 }
 0xb90   :  { %v958_v26 = vadd.f32 1e-05, %v956_v25 }
 0xb91   :  { %v955_v28 = vpop.xlane.xlu1 %954 }
 0xb92   :  { %1259 = vrsqrt.f32 %v958_v26  ;;  %v957_v29 = vmul.f32 0.03125, %v955_v28 }
 0xb94   :  { %v959_v30 = vadd.f32 1e-05, %v957_v29 }
 0xb96   :  { %1261 = vrsqrt.f32 %v959_v30 }
 0xb9f   :  { %v1260_v31 = vpop.eup %1259 }
 0xba0   :  { %v962_v20 = vmul.f32 %v1260_v31, %v946_v14 }
 0xba2   :  { %v970_v33 = vmul.f32 %v1070_v3, %v962_v20 }
 0xba3   :  { %v1262_v4 = vpop.eup %1261 }
 0xba4   :  { %v963_v34 = vmul.f32 %v1262_v4, %v947_v19  ;;  %v978_v35 = vadd.f32 %v1071_v32, %v970_v33 }
 0xba6   :  { %v971_v27 = vmul.f32 %v1070_v3, %v963_v34  ;;  %v980_v36 = vpack.c.bf16 %v978_v35, %v978_v35 }
 0xba8   :  { %v979_v37 = vadd.f32 %v1071_v32, %v971_v27  ;;  %983 = vst.msk [vmem:[#allocation7] sm:$0xf] %vm982_vm11, %v980_v36 }
 0xbaa   :  { %v981_v38 = vpack.c.bf16 %v979_v37, %v979_v37 }
 0xbac   :  { %984 = vst.msk [vmem:[#allocation7 + $0x4] sm:$0xf] %vm982_vm11, %v981_v38 }
 0xbad   :  { %1314 = shalt.err (!%p1311_p1)
}
 0xbae   :  { %996 = dma.vmem_to_hbm [thread:$0]  %s991_s21, 128, %s1657_s13, [#allocation6], %s1338_s16, %s1338_s16, %s1339_s17  }
 0xbaf   :  { %1329 = dma.done.wait [#allocation6], 128  }
 0xbb0   :  { %1330 = vsyncadd [#allocation6], 4294967168 }
 0xbb1   :  { %1331 = dma.done.wait [#allocation9], 256  }
 0xbb2   :  { %1332 = vsyncadd [#allocation9], 4294967040 }
 0xbb3   :  { %1015 = vsyncpa [#allocation5], 1 }
 0xbb4   :  { %1016 = vsyncpa [#allocation6], 1 }
 0xbb5   :  { %1017 = vsyncpa [#allocation9], 1 }

</bundles_post_ra>
